<compile_context>
chip_gen: v5e
topology: v5e:2x2
jax: 0.10.0
libtpu: 0.0.40
codegen_flags: <defaults>
</compile_context>

<pallas_src>
import math

import jax
import jax.numpy as jnp
import numpy as np
from jax.experimental import pallas as pl
from jax.experimental.pallas import tpu as pltpu

# ----------------------------- config ---------------------------------------
VOCAB = 64        # cfg.vocab_size
BLOCK_SIZE = 16   # cfg.block_size
N_LAYER = 2       # cfg.n_layer
N_HEAD = 4        # cfg.n_head
N_EMBD = 32       # cfg.n_embd
HEAD_DIM = N_EMBD // N_HEAD
LN_EPS = 1e-5
ATTN_SCALE = 1.0 / math.sqrt(HEAD_DIM)
VPAD = ((VOCAB + 127) // 128) * 128   # lane-dense padded vocab (128)
# cfg.dropout = 0.0 -> dropout is an identity in this forward pass.


# ------------------------- shared math helpers -------------------------------
def _layernorm(x, w, b):
    mu = jnp.mean(x, axis=-1, keepdims=True)
    var = jnp.mean((x - mu) ** 2, axis=-1, keepdims=True)
    return (x - mu) * jax.lax.rsqrt(var + LN_EPS) * w + b


def _causal_bias(t):
    rows = jax.lax.broadcasted_iota(jnp.int32, (t, t), 0)
    cols = jax.lax.broadcasted_iota(jnp.int32, (t, t), 1)
    return jnp.where(rows >= cols, 0.0, -1e30).astype(jnp.float32)


# ----------------------------- fused kernel ----------------------------------
def _make_gpt2_kernel(seqlen):
    T, C, H, HD, L = seqlen, N_EMBD, N_HEAD, HEAD_DIM, N_LAYER
    f32, bf16 = jnp.float32, jnp.bfloat16

    def kernel(idx_ref,                       # SMEM (B, T) int32 (scalar prefetch)
               wte_ref, wpe_ref,
               ln1w_ref, ln1b_ref, wqkv_ref, bqkv_ref, wproj_ref, bproj_ref,
               ln2w_ref, ln2b_ref, wfc_ref, bfc_ref, wfc2_ref, bfc2_ref,
               lnfw_ref, lnfb_ref, out_ref):
        b = pl.program_id(0)

        # ---- token embedding: one-hot (ids from SMEM) x padded bf16 table ----
        # TODO(synk): at real vocab sizes replace the O(T*V*C) one-hot matmul
        # with a scalar-prefetch DMA row gather from HBM.
        row_i = jax.lax.broadcasted_iota(jnp.int32, (T, VPAD), 0)
        col_i = jax.lax.broadcasted_iota(jnp.int32, (T, VPAD), 1)
        ids = jnp.zeros((T, VPAD), jnp.int32)
        for t in range(T):
            ids = jnp.where(row_i == t, idx_ref[b, t], ids)
        one_hot = (ids == col_i).astype(bf16)                         # (T,VPAD)
        tok = jnp.dot(one_hot, wte_ref[...], preferred_element_type=f32)
        x = tok + wpe_ref[...]                                        # (T, C)
        # dropout(p=0.0) == identity

        # causal additive mask: built once, reused by every layer
        mask_bias = _causal_bias(T)[None, :, :]                       # (1,T,T)

        for l in range(L):
            # -------- causal self-attention (fused QKV, heads batched) -------
            h = _layernorm(x, ln1w_ref[l], ln1b_ref[l])               # (T, C)
            qkv = jnp.dot(h.astype(bf16), wqkv_ref[l],
                          preferred_element_type=f32) + bqkv_ref[l]   # (T, 3C)
            # ATTN_SCALE is already folded into the Q columns (wrapper).
            qh = jnp.transpose(qkv[:, 0 * C:1 * C].reshape(T, H, HD), (1, 0, 2))
            kh = jnp.transpose(qkv[:, 1 * C:2 * C].reshape(T, H, HD), (1, 0, 2))
            vh = jnp.transpose(qkv[:, 2 * C:3 * C].reshape(T, H, HD), (1, 0, 2))
            att = jnp.einsum('hqd,hkd->hqk', qh.astype(bf16), kh.astype(bf16),
                             preferred_element_type=f32)              # (H,T,T)
            att = att + mask_bias
            att = att - jnp.max(att, axis=-1, keepdims=True)
            p = jnp.exp(att)
            # NOTE: approximate EUP reciprocal -> softmax rows do not sum to
            # exactly 1 (covered by the test tolerance).
            p = p * pl.reciprocal(jnp.sum(p, axis=-1, keepdims=True),
                                  approx=True)
            o = jnp.einsum('hqk,hkd->hqd', p.astype(bf16), vh.astype(bf16),
                           preferred_element_type=f32)                # (H,T,HD)
            o2 = jnp.transpose(o, (1, 0, 2)).reshape(T, C)            # (T, C)
            y = jnp.dot(o2.astype(bf16), wproj_ref[l],
                        preferred_element_type=f32) + bproj_ref[l]
            x = x + y

            # ------------------------------- MLP -----------------------------
            h2 = _layernorm(x, ln2w_ref[l], ln2b_ref[l])
            m = jnp.dot(h2.astype(bf16), wfc_ref[l],
                        preferred_element_type=f32) + bfc_ref[l]      # (T, 4C)
            # TODO(synk): PyTorch nn.GELU() defaults to the exact erf form; the
            # tanh approximation is used since it lowers cleanly on the EUP.
            m = jax.nn.gelu(m, approximate=True)
            x = x + jnp.dot(m.astype(bf16), wfc2_ref[l],
                            preferred_element_type=f32) + bfc2_ref[l]

        # ---- final LN + tied lm_head (single wte copy, contract C of both) ---
        hf = _layernorm(x, lnfw_ref[...], lnfb_ref[...])
        out_ref[...] = jax.lax.dot_general(
            hf.astype(bf16), wte_ref[...],
            dimension_numbers=(((1,), (1,)), ((), ())),
            preferred_element_type=f32)                               # (T,VPAD)

    return kernel


# ------------------------- kernel input preparation ---------------------------
def _prepare_kernel_inputs(params, T):
    L, C = N_LAYER, N_EMBD
    bf16 = jnp.bfloat16

    def stack(name):
        return jnp.stack([params['blocks'][l][name] for l in range(L)])

    wattn = stack('wattn')                                  # (L, C, 3C)
    battn = stack('battn')                                  # (L, 1, 3C)

    # fold attention scale into the Q projection (free at trace time)
    qkv_scale = jnp.concatenate([jnp.full((C,), ATTN_SCALE, jnp.float32),
                                 jnp.ones((2 * C,), jnp.float32)])
    wqkv = (wattn * qkv_scale).astype(bf16)                 # (L, C, 3C) bf16
    bqkv = battn * qkv_scale                                # (L, 1, 3C) f32

    # single, vocab-padded (lane-dense lm_head output) bf16 embedding table
    wte_pad = jnp.zeros((VPAD, C), bf16).at[:VOCAB, :].set(
        params['wte'].astype(bf16))

    wpe_t = params['wpe'][:T, :]                            # (T, C) f32

    return (
        wte_pad, wpe_t,
        stack('ln1w'), stack('ln1b'),
        wqkv, bqkv,
        stack('wproj').astype(bf16), stack('bproj'),
        stack('ln2w'), stack('ln2b'),
        stack('wfc').astype(bf16), stack('bfc'),
        stack('wfc2').astype(bf16), stack('bfc2'),
        params['lnfw'], params['lnfb'],
    )


# ------------------------------ model wrapper ---------------------------------
@jax.jit
def gpt2_forward(idx, params):
    B, T = idx.shape
    assert T <= BLOCK_SIZE
    inputs = _prepare_kernel_inputs(params, T)

    def full_spec(x):
        nd = x.ndim
        return pl.BlockSpec(x.shape, lambda b, ids, _nd=nd: (0,) * _nd)

    grid_spec = pltpu.PrefetchScalarGridSpec(
        num_scalar_prefetch=1,                  # idx lives in SMEM
        grid=(B,),                              # one batch row per grid step
        in_specs=[full_spec(x) for x in inputs],
        out_specs=pl.BlockSpec((None, T, VPAD), lambda b, ids: (b, 0, 0)),
    )
    logits_pad = pl.pallas_call(
        _make_gpt2_kernel(T),
        out_shape=jax.ShapeDtypeStruct((B, T, VPAD), jnp.float32),
        grid_spec=grid_spec,
        compiler_params=pltpu.CompilerParams(
            dimension_semantics=("parallel",)),  # shard batch across TCs (v7x)
    )(idx.astype(jnp.int32), *inputs)
    return logits_pad[:, :, :VOCAB]


# ------------------------------ reference -------------------------------------
def gpt2_reference(idx, params):
    """Pure-JAX reference mirroring the PyTorch forward (same bf16 matmul
    operands / f32 accumulation as the kernel)."""
    B, T = idx.shape
    C, H, HD = N_EMBD, N_HEAD, HEAD_DIM
    f32, bf16 = jnp.float32, jnp.bfloat16

    wte_b = params['wte'].astype(bf16).astype(f32)
    x = (wte_b[idx] + params['wpe'][:T][None, :, :]).reshape(B * T, C)
    mask = _causal_bias(T)

    for l in range(N_LAYER):
        p = params['blocks'][l]
        h = _layernorm(x, p['ln1w'], p['ln1b'])
        qkv = jnp.dot(h.astype(bf16), p['wattn'].astype(bf16),
                      preferred_element_type=f32) + p['battn']
        q, k, v = jnp.split(qkv, 3, axis=-1)

        def heads(z):
            return jnp.transpose(z.reshape(B, T, H, HD), (0, 2, 1, 3))

        qh, kh, vh = heads(q) * ATTN_SCALE, heads(k), heads(v)
        att = jnp.einsum('bhqd,bhkd->bhqk', qh.astype(bf16), kh.astype(bf16),
                         preferred_element_type=f32)
        att = att + mask[None, None, :, :]
        att = att - jnp.max(att, axis=-1, keepdims=True)
        pr = jnp.exp(att)
        pr = pr / jnp.sum(pr, axis=-1, keepdims=True)
        o = jnp.einsum('bhqk,bhkd->bhqd', pr.astype(bf16), vh.astype(bf16),
                       preferred_element_type=f32)
        o = jnp.transpose(o, (0, 2, 1, 3)).reshape(B * T, C)
        y = jnp.dot(o.astype(bf16), p['wproj'].astype(bf16),
                    preferred_element_type=f32) + p['bproj']
        x = x + y

        h2 = _layernorm(x, p['ln2w'], p['ln2b'])
        m = jax.nn.gelu(jnp.dot(h2.astype(bf16), p['wfc'].astype(bf16),
                                preferred_element_type=f32) + p['bfc'],
                        approximate=True)
        x = x + jnp.dot(m.astype(bf16), p['wfc2'].astype(bf16),
                        preferred_element_type=f32) + p['bfc2']

    hf = _layernorm(x, params['lnfw'], params['lnfb'])
    logits = jnp.dot(hf.astype(bf16), params['wte'].T.astype(bf16),
                     preferred_element_type=f32)
    return logits.reshape(B, T, VOCAB)


# ------------------------------ parameters ------------------------------------
def init_params(key):
    c = N_EMBD
    std = 0.02
    proj_std = 0.02 / math.sqrt(2 * N_LAYER)   # GPT-2 residual-proj scaling
    # 2 embedding tables + 4 random weight matrices per layer
    ks = iter(jax.random.split(key, 2 + 4 * N_LAYER))

    params = {
        'wte': std * jax.random.normal(next(ks), (VOCAB, c), jnp.float32),
        'wpe': std * jax.random.normal(next(ks), (BLOCK_SIZE, c), jnp.float32),
        'lnfw': jnp.ones((1, c), jnp.float32),
        'lnfb': jnp.zeros((1, c), jnp.float32),
        'blocks': [],
    }
    for _ in range(N_LAYER):
        params['blocks'].append({
            'ln1w': jnp.ones((1, c), jnp.float32),
            'ln1b': jnp.zeros((1, c), jnp.float32),
            'wattn': std * jax.random.normal(next(ks), (c, 3 * c), jnp.float32),
            'battn': jnp.zeros((1, 3 * c), jnp.float32),
            'wproj': proj_std * jax.random.normal(next(ks), (c, c), jnp.float32),
            'bproj': jnp.zeros((1, c), jnp.float32),
            'ln2w': jnp.ones((1, c), jnp.float32),
            'ln2b': jnp.zeros((1, c), jnp.float32),
            'wfc': std * jax.random.normal(next(ks), (c, 4 * c), jnp.float32),
            'bfc': jnp.zeros((1, 4 * c), jnp.float32),
            'wfc2': proj_std * jax.random.normal(next(ks), (4 * c, c),
                                                 jnp.float32),
            'bfc2': jnp.zeros((1, c), jnp.float32),
        })
    return params


# --------------------------------- main ----------------------------------------
if __name__ == "__main__":
    key = jax.random.PRNGKey(0)
    pkey, ikey = jax.random.split(key)
    params = init_params(pkey)

    B, T = 2, 8
    idx = jax.random.randint(ikey, (B, T), 0, VOCAB, dtype=jnp.int32)

    logits = jax.block_until_ready(gpt2_forward(idx, params))

    assert logits.shape == (B, T, VOCAB)
    assert bool(jnp.all(jnp.isfinite(logits)))

    ref = gpt2_reference(idx, params)
    np.testing.assert_allclose(np.asarray(logits), np.asarray(ref),
                               atol=5e-3, rtol=5e-3)

    print("KERNEL_OK")
</pallas_src>

<mosaic_0001>
module attributes {stable_mosaic.version = 11 : i64} {
  func.func @kernel(%arg0: i32, %arg1: memref<2x8xi32, #tpu.memory_space<smem>>, %arg2: memref<128x32xbf16, #tpu.memory_space<vmem>>, %arg3: memref<8x32xf32, #tpu.memory_space<vmem>>, %arg4: memref<2x1x32xf32, #tpu.memory_space<vmem>>, %arg5: memref<2x1x32xf32, #tpu.memory_space<vmem>>, %arg6: memref<2x32x96xbf16, #tpu.memory_space<vmem>>, %arg7: memref<2x1x96xf32, #tpu.memory_space<vmem>>, %arg8: memref<2x32x32xbf16, #tpu.memory_space<vmem>>, %arg9: memref<2x1x32xf32, #tpu.memory_space<vmem>>, %arg10: memref<2x1x32xf32, #tpu.memory_space<vmem>>, %arg11: memref<2x1x32xf32, #tpu.memory_space<vmem>>, %arg12: memref<2x32x128xbf16, #tpu.memory_space<vmem>>, %arg13: memref<2x1x128xf32, #tpu.memory_space<vmem>>, %arg14: memref<2x128x32xbf16, #tpu.memory_space<vmem>>, %arg15: memref<2x1x32xf32, #tpu.memory_space<vmem>>, %arg16: memref<1x32xf32, #tpu.memory_space<vmem>>, %arg17: memref<1x32xf32, #tpu.memory_space<vmem>>, %arg18: memref<1x8x128xf32, #tpu.memory_space<vmem>>) attributes {dimension_semantics = [#tpu.dimension_semantics<parallel>], iteration_bounds = array<i64: 2>, scalar_prefetch = 1 : i64, scratch_operands = 0 : i64, tpu.core_type = #tpu.core_type<tc>, window_params = [{pipeline_mode = #tpu.pipeline_mode<synchronous>, transform_indices = @transform_0, window_bounds = array<i64: 128, 32>}, {pipeline_mode = #tpu.pipeline_mode<synchronous>, transform_indices = @transform_1, window_bounds = array<i64: 8, 32>}, {pipeline_mode = #tpu.pipeline_mode<synchronous>, transform_indices = @transform_2, window_bounds = array<i64: 2, 1, 32>}, {pipeline_mode = #tpu.pipeline_mode<synchronous>, transform_indices = @transform_3, window_bounds = array<i64: 2, 1, 32>}, {pipeline_mode = #tpu.pipeline_mode<synchronous>, transform_indices = @transform_4, window_bounds = array<i64: 2, 32, 96>}, {pipeline_mode = #tpu.pipeline_mode<synchronous>, transform_indices = @transform_5, window_bounds = array<i64: 2, 1, 96>}, {pipeline_mode = #tpu.pipeline_mode<synchronous>, transform_indices = @transform_6, window_bounds = array<i64: 2, 32, 32>}, {pipeline_mode = #tpu.pipeline_mode<synchronous>, transform_indices = @transform_7, window_bounds = array<i64: 2, 1, 32>}, {pipeline_mode = #tpu.pipeline_mode<synchronous>, transform_indices = @transform_8, window_bounds = array<i64: 2, 1, 32>}, {pipeline_mode = #tpu.pipeline_mode<synchronous>, transform_indices = @transform_9, window_bounds = array<i64: 2, 1, 32>}, {pipeline_mode = #tpu.pipeline_mode<synchronous>, transform_indices = @transform_10, window_bounds = array<i64: 2, 32, 128>}, {pipeline_mode = #tpu.pipeline_mode<synchronous>, transform_indices = @transform_11, window_bounds = array<i64: 2, 1, 128>}, {pipeline_mode = #tpu.pipeline_mode<synchronous>, transform_indices = @transform_12, window_bounds = array<i64: 2, 128, 32>}, {pipeline_mode = #tpu.pipeline_mode<synchronous>, transform_indices = @transform_13, window_bounds = array<i64: 2, 1, 32>}, {pipeline_mode = #tpu.pipeline_mode<synchronous>, transform_indices = @transform_14, window_bounds = array<i64: 1, 32>}, {pipeline_mode = #tpu.pipeline_mode<synchronous>, transform_indices = @transform_15, window_bounds = array<i64: 1, 32>}, {transform_indices = @transform_16, window_bounds = array<i64: 1, 8, 128>}]} {
    %0 = tpu.iota {dimensions = array<i32: 0>} : vector<8x128xi32>
    %1 = tpu.iota {dimensions = array<i32: 1>} : vector<8x128xi32>
    %c0_i32 = arith.constant 0 : i32
    %2 = vector.broadcast %c0_i32 : i32 to vector<8x128xi32>
    %c0_i32_0 = arith.constant 0 : i32
    %3 = vector.broadcast %c0_i32_0 : i32 to vector<8x128xi32>
    %4 = arith.cmpi eq, %0, %3 : vector<8x128xi32>
    %5 = arith.index_cast %arg0 : i32 to index
    %c0 = arith.constant 0 : index
    %6 = memref.load %arg1[%5, %c0] : memref<2x8xi32, #tpu.memory_space<smem>>
    %7 = vector.broadcast %6 : i32 to vector<8x128xi32>
    %8 = arith.select %4, %7, %2 : vector<8x128xi1>, vector<8x128xi32>
    %c1_i32 = arith.constant 1 : i32
    %9 = vector.broadcast %c1_i32 : i32 to vector<8x128xi32>
    %10 = arith.cmpi eq, %0, %9 : vector<8x128xi32>
    %11 = arith.index_cast %arg0 : i32 to index
    %c1 = arith.constant 1 : index
    %12 = memref.load %arg1[%11, %c1] : memref<2x8xi32, #tpu.memory_space<smem>>
    %13 = vector.broadcast %12 : i32 to vector<8x128xi32>
    %14 = arith.select %10, %13, %8 : vector<8x128xi1>, vector<8x128xi32>
    %c2_i32 = arith.constant 2 : i32
    %15 = vector.broadcast %c2_i32 : i32 to vector<8x128xi32>
    %16 = arith.cmpi eq, %0, %15 : vector<8x128xi32>
    %17 = arith.index_cast %arg0 : i32 to index
    %c2 = arith.constant 2 : index
    %18 = memref.load %arg1[%17, %c2] : memref<2x8xi32, #tpu.memory_space<smem>>
    %19 = vector.broadcast %18 : i32 to vector<8x128xi32>
    %20 = arith.select %16, %19, %14 : vector<8x128xi1>, vector<8x128xi32>
    %c3_i32 = arith.constant 3 : i32
    %21 = vector.broadcast %c3_i32 : i32 to vector<8x128xi32>
    %22 = arith.cmpi eq, %0, %21 : vector<8x128xi32>
    %23 = arith.index_cast %arg0 : i32 to index
    %c3 = arith.constant 3 : index
    %24 = memref.load %arg1[%23, %c3] : memref<2x8xi32, #tpu.memory_space<smem>>
    %25 = vector.broadcast %24 : i32 to vector<8x128xi32>
    %26 = arith.select %22, %25, %20 : vector<8x128xi1>, vector<8x128xi32>
    %c4_i32 = arith.constant 4 : i32
    %27 = vector.broadcast %c4_i32 : i32 to vector<8x128xi32>
    %28 = arith.cmpi eq, %0, %27 : vector<8x128xi32>
    %29 = arith.index_cast %arg0 : i32 to index
    %c4 = arith.constant 4 : index
    %30 = memref.load %arg1[%29, %c4] : memref<2x8xi32, #tpu.memory_space<smem>>
    %31 = vector.broadcast %30 : i32 to vector<8x128xi32>
    %32 = arith.select %28, %31, %26 : vector<8x128xi1>, vector<8x128xi32>
    %c5_i32 = arith.constant 5 : i32
    %33 = vector.broadcast %c5_i32 : i32 to vector<8x128xi32>
    %34 = arith.cmpi eq, %0, %33 : vector<8x128xi32>
    %35 = arith.index_cast %arg0 : i32 to index
    %c5 = arith.constant 5 : index
    %36 = memref.load %arg1[%35, %c5] : memref<2x8xi32, #tpu.memory_space<smem>>
    %37 = vector.broadcast %36 : i32 to vector<8x128xi32>
    %38 = arith.select %34, %37, %32 : vector<8x128xi1>, vector<8x128xi32>
    %c6_i32 = arith.constant 6 : i32
    %39 = vector.broadcast %c6_i32 : i32 to vector<8x128xi32>
    %40 = arith.cmpi eq, %0, %39 : vector<8x128xi32>
    %41 = arith.index_cast %arg0 : i32 to index
    %c6 = arith.constant 6 : index
    %42 = memref.load %arg1[%41, %c6] : memref<2x8xi32, #tpu.memory_space<smem>>
    %43 = vector.broadcast %42 : i32 to vector<8x128xi32>
    %44 = arith.select %40, %43, %38 : vector<8x128xi1>, vector<8x128xi32>
    %c7_i32 = arith.constant 7 : i32
    %45 = vector.broadcast %c7_i32 : i32 to vector<8x128xi32>
    %46 = arith.cmpi eq, %0, %45 : vector<8x128xi32>
    %47 = arith.index_cast %arg0 : i32 to index
    %c7 = arith.constant 7 : index
    %48 = memref.load %arg1[%47, %c7] : memref<2x8xi32, #tpu.memory_space<smem>>
    %49 = vector.broadcast %48 : i32 to vector<8x128xi32>
    %50 = arith.select %46, %49, %44 : vector<8x128xi1>, vector<8x128xi32>
    %51 = arith.cmpi eq, %50, %1 : vector<8x128xi32>
    %52 = arith.extui %51 : vector<8x128xi1> to vector<8x128xi32>
    %53 = arith.sitofp %52 : vector<8x128xi32> to vector<8x128xf32>
    %54 = arith.truncf %53 : vector<8x128xf32> to vector<8x128xbf16>
    %c0_1 = arith.constant 0 : index
    %c0_2 = arith.constant 0 : index
    %55 = vector.load %arg2[%c0_1, %c0_2] : memref<128x32xbf16, #tpu.memory_space<vmem>>, vector<128x32xbf16>
    %cst = arith.constant dense<0.000000e+00> : vector<8x32xf32>
    %56 = tpu.matmul %54, %55, %cst {dimension_numbers = #tpu.dot_dimension_numbers<[1], [0], [0], [1], [0, 0, 1, 1], [], []>} : vector<8x128xbf16>, vector<128x32xbf16>, vector<8x32xf32> -> vector<8x32xf32>
    %c0_3 = arith.constant 0 : index
    %c0_4 = arith.constant 0 : index
    %57 = vector.load %arg3[%c0_3, %c0_4] : memref<8x32xf32, #tpu.memory_space<vmem>>, vector<8x32xf32>
    %58 = arith.addf %56, %57 : vector<8x32xf32>
    %59 = tpu.iota {dimensions = array<i32: 0>} : vector<8x8xi32>
    %60 = tpu.iota {dimensions = array<i32: 1>} : vector<8x8xi32>
    %61 = arith.cmpi sge, %59, %60 : vector<8x8xi32>
    %cst_5 = arith.constant 0.000000e+00 : f32
    %cst_6 = arith.constant -1.000000e+30 : f32
    %62 = vector.broadcast %cst_5 : f32 to vector<8x8xf32>
    %63 = vector.broadcast %cst_6 : f32 to vector<8x8xf32>
    %64 = arith.select %61, %62, %63 : vector<8x8xi1>, vector<8x8xf32>
    %65 = vector.shape_cast %64 : vector<8x8xf32> to vector<1x8x8xf32>
    %c0_7 = arith.constant 0 : index
    %c0_8 = arith.constant 0 : index
    %c0_9 = arith.constant 0 : index
    %66 = vector.load %arg4[%c0_7, %c0_8, %c0_9] : memref<2x1x32xf32, #tpu.memory_space<vmem>>, vector<1x1x32xf32>
    %67 = vector.shape_cast %66 : vector<1x1x32xf32> to vector<1x32xf32>
    %c0_10 = arith.constant 0 : index
    %c0_11 = arith.constant 0 : index
    %c0_12 = arith.constant 0 : index
    %68 = vector.load %arg5[%c0_10, %c0_11, %c0_12] : memref<2x1x32xf32, #tpu.memory_space<vmem>>, vector<1x1x32xf32>
    %69 = vector.shape_cast %68 : vector<1x1x32xf32> to vector<1x32xf32>
    %cst_13 = arith.constant dense<0.000000e+00> : vector<8xf32>
    %70 = vector.multi_reduction <add>, %58, %cst_13 [1] : vector<8x32xf32> to vector<8xf32>
    %71 = vector.shape_cast %70 : vector<8xf32> to vector<8x1xf32>
    %cst_14 = arith.constant 3.200000e+01 : f32
    %72 = vector.broadcast %cst_14 : f32 to vector<8x1xf32>
    %73 = arith.divf %71, %72 : vector<8x1xf32>
    %74 = vector.broadcast %73 : vector<8x1xf32> to vector<8x32xf32>
    %75 = arith.subf %58, %74 : vector<8x32xf32>
    %76 = arith.mulf %75, %75 : vector<8x32xf32>
    %cst_15 = arith.constant dense<0.000000e+00> : vector<8xf32>
    %77 = vector.multi_reduction <add>, %76, %cst_15 [1] : vector<8x32xf32> to vector<8xf32>
    %78 = vector.shape_cast %77 : vector<8xf32> to vector<8x1xf32>
    %cst_16 = arith.constant 3.200000e+01 : f32
    %79 = vector.broadcast %cst_16 : f32 to vector<8x1xf32>
    %80 = arith.divf %78, %79 : vector<8x1xf32>
    %81 = vector.broadcast %73 : vector<8x1xf32> to vector<8x32xf32>
    %82 = arith.subf %58, %81 : vector<8x32xf32>
    %cst_17 = arith.constant 9.99999974E-6 : f32
    %83 = vector.broadcast %cst_17 : f32 to vector<8x1xf32>
    %84 = arith.addf %80, %83 : vector<8x1xf32>
    %85 = math.rsqrt %84 : vector<8x1xf32>
    %86 = vector.broadcast %85 : vector<8x1xf32> to vector<8x32xf32>
    %87 = arith.mulf %82, %86 : vector<8x32xf32>
    %88 = vector.broadcast %67 : vector<1x32xf32> to vector<8x32xf32>
    %89 = arith.mulf %87, %88 : vector<8x32xf32>
    %90 = vector.broadcast %69 : vector<1x32xf32> to vector<8x32xf32>
    %91 = arith.addf %89, %90 : vector<8x32xf32>
    %92 = arith.truncf %91 : vector<8x32xf32> to vector<8x32xbf16>
    %c0_18 = arith.constant 0 : index
    %c0_19 = arith.constant 0 : index
    %c0_20 = arith.constant 0 : index
    %93 = vector.load %arg6[%c0_18, %c0_19, %c0_20] : memref<2x32x96xbf16, #tpu.memory_space<vmem>>, vector<1x32x96xbf16>
    %94 = vector.shape_cast %93 : vector<1x32x96xbf16> to vector<32x96xbf16>
    %cst_21 = arith.constant dense<0.000000e+00> : vector<8x96xf32>
    %95 = tpu.matmul %92, %94, %cst_21 {dimension_numbers = #tpu.dot_dimension_numbers<[1], [0], [0], [1], [0, 0, 1, 1], [], []>} : vector<8x32xbf16>, vector<32x96xbf16>, vector<8x96xf32> -> vector<8x96xf32>
    %c0_22 = arith.constant 0 : index
    %c0_23 = arith.constant 0 : index
    %c0_24 = arith.constant 0 : index
    %96 = vector.load %arg7[%c0_22, %c0_23, %c0_24] : memref<2x1x96xf32, #tpu.memory_space<vmem>>, vector<1x1x96xf32>
    %97 = vector.shape_cast %96 : vector<1x1x96xf32> to vector<1x96xf32>
    %98 = vector.broadcast %97 : vector<1x96xf32> to vector<8x96xf32>
    %99 = arith.addf %95, %98 : vector<8x96xf32>
    %100 = vector.extract_strided_slice %99 {offsets = [0, 0], sizes = [8, 32], strides = [1, 1]} : vector<8x96xf32> to vector<8x32xf32>
    %101 = vector.shape_cast %100 : vector<8x32xf32> to vector<8x4x8xf32>
    %102 = tpu.transpose %101, [1, 0, 2] : vector<8x4x8xf32> -> vector<4x8x8xf32>
    %103 = vector.extract_strided_slice %99 {offsets = [0, 32], sizes = [8, 32], strides = [1, 1]} : vector<8x96xf32> to vector<8x32xf32>
    %104 = vector.shape_cast %103 : vector<8x32xf32> to vector<8x4x8xf32>
    %105 = tpu.transpose %104, [1, 0, 2] : vector<8x4x8xf32> -> vector<4x8x8xf32>
    %106 = vector.extract_strided_slice %99 {offsets = [0, 64], sizes = [8, 32], strides = [1, 1]} : vector<8x96xf32> to vector<8x32xf32>
    %107 = vector.shape_cast %106 : vector<8x32xf32> to vector<8x4x8xf32>
    %108 = tpu.transpose %107, [1, 0, 2] : vector<8x4x8xf32> -> vector<4x8x8xf32>
    %109 = arith.truncf %102 : vector<4x8x8xf32> to vector<4x8x8xbf16>
    %110 = arith.truncf %105 : vector<4x8x8xf32> to vector<4x8x8xbf16>
    "tpu.trace_start"() <{level = 10 : i32, message = "hqd,hkd->hqk"}> : () -> ()
    %cst_25 = arith.constant dense<0.000000e+00> : vector<4x8x8xf32>
    %111 = tpu.matmul %109, %110, %cst_25 {dimension_numbers = #tpu.dot_dimension_numbers<[2], [2], [1], [1], [0, 0, 0, 1, 1, 1], [0], [0]>} : vector<4x8x8xbf16>, vector<4x8x8xbf16>, vector<4x8x8xf32> -> vector<4x8x8xf32>
    "tpu.trace_stop"() : () -> ()
    %112 = vector.broadcast %65 : vector<1x8x8xf32> to vector<4x8x8xf32>
    %113 = arith.addf %111, %112 : vector<4x8x8xf32>
    %cst_26 = arith.constant dense<0xFF800000> : vector<4x8xf32>
    %114 = vector.multi_reduction <maximumf>, %113, %cst_26 [2] : vector<4x8x8xf32> to vector<4x8xf32>
    %115 = vector.shape_cast %114 : vector<4x8xf32> to vector<4x8x1xf32>
    %116 = vector.broadcast %115 : vector<4x8x1xf32> to vector<4x8x8xf32>
    %117 = arith.subf %113, %116 : vector<4x8x8xf32>
    %118 = math.exp %117 : vector<4x8x8xf32>
    %cst_27 = arith.constant dense<0.000000e+00> : vector<4x8xf32>
    %119 = vector.multi_reduction <add>, %118, %cst_27 [2] : vector<4x8x8xf32> to vector<4x8xf32>
    %120 = vector.shape_cast %119 : vector<4x8xf32> to vector<4x8x1xf32>
    %121 = tpu.reciprocal %120 {approx = true} : vector<4x8x1xf32> -> vector<4x8x1xf32>
    %122 = vector.broadcast %121 : vector<4x8x1xf32> to vector<4x8x8xf32>
    %123 = arith.mulf %118, %122 : vector<4x8x8xf32>
    %124 = arith.truncf %123 : vector<4x8x8xf32> to vector<4x8x8xbf16>
    %125 = arith.truncf %108 : vector<4x8x8xf32> to vector<4x8x8xbf16>
    "tpu.trace_start"() <{level = 10 : i32, message = "hqk,hkd->hqd"}> : () -> ()
    %cst_28 = arith.constant dense<0.000000e+00> : vector<4x8x8xf32>
    %126 = tpu.matmul %124, %125, %cst_28 {dimension_numbers = #tpu.dot_dimension_numbers<[2], [1], [1], [2], [0, 0, 0, 1, 1, 2], [0], [0]>} : vector<4x8x8xbf16>, vector<4x8x8xbf16>, vector<4x8x8xf32> -> vector<4x8x8xf32>
    "tpu.trace_stop"() : () -> ()
    %127 = tpu.transpose %126, [1, 0, 2] : vector<4x8x8xf32> -> vector<8x4x8xf32>
    %128 = vector.shape_cast %127 : vector<8x4x8xf32> to vector<8x32xf32>
    %129 = arith.truncf %128 : vector<8x32xf32> to vector<8x32xbf16>
    %c0_29 = arith.constant 0 : index
    %c0_30 = arith.constant 0 : index
    %c0_31 = arith.constant 0 : index
    %130 = vector.load %arg8[%c0_29, %c0_30, %c0_31] : memref<2x32x32xbf16, #tpu.memory_space<vmem>>, vector<1x32x32xbf16>
    %131 = vector.shape_cast %130 : vector<1x32x32xbf16> to vector<32x32xbf16>
    %cst_32 = arith.constant dense<0.000000e+00> : vector<8x32xf32>
    %132 = tpu.matmul %129, %131, %cst_32 {dimension_numbers = #tpu.dot_dimension_numbers<[1], [0], [0], [1], [0, 0, 1, 1], [], []>} : vector<8x32xbf16>, vector<32x32xbf16>, vector<8x32xf32> -> vector<8x32xf32>
    %c0_33 = arith.constant 0 : index
    %c0_34 = arith.constant 0 : index
    %c0_35 = arith.constant 0 : index
    %133 = vector.load %arg9[%c0_33, %c0_34, %c0_35] : memref<2x1x32xf32, #tpu.memory_space<vmem>>, vector<1x1x32xf32>
    %134 = vector.shape_cast %133 : vector<1x1x32xf32> to vector<1x32xf32>
    %135 = vector.broadcast %134 : vector<1x32xf32> to vector<8x32xf32>
    %136 = arith.addf %132, %135 : vector<8x32xf32>
    %137 = arith.addf %58, %136 : vector<8x32xf32>
    %c0_36 = arith.constant 0 : index
    %c0_37 = arith.constant 0 : index
    %c0_38 = arith.constant 0 : index
    %138 = vector.load %arg10[%c0_36, %c0_37, %c0_38] : memref<2x1x32xf32, #tpu.memory_space<vmem>>, vector<1x1x32xf32>
    %139 = vector.shape_cast %138 : vector<1x1x32xf32> to vector<1x32xf32>
    %c0_39 = arith.constant 0 : index
    %c0_40 = arith.constant 0 : index
    %c0_41 = arith.constant 0 : index
    %140 = vector.load %arg11[%c0_39, %c0_40, %c0_41] : memref<2x1x32xf32, #tpu.memory_space<vmem>>, vector<1x1x32xf32>
    %141 = vector.shape_cast %140 : vector<1x1x32xf32> to vector<1x32xf32>
    %cst_42 = arith.constant dense<0.000000e+00> : vector<8xf32>
    %142 = vector.multi_reduction <add>, %137, %cst_42 [1] : vector<8x32xf32> to vector<8xf32>
    %143 = vector.shape_cast %142 : vector<8xf32> to vector<8x1xf32>
    %cst_43 = arith.constant 3.200000e+01 : f32
    %144 = vector.broadcast %cst_43 : f32 to vector<8x1xf32>
    %145 = arith.divf %143, %144 : vector<8x1xf32>
    %146 = vector.broadcast %145 : vector<8x1xf32> to vector<8x32xf32>
    %147 = arith.subf %137, %146 : vector<8x32xf32>
    %148 = arith.mulf %147, %147 : vector<8x32xf32>
    %cst_44 = arith.constant dense<0.000000e+00> : vector<8xf32>
    %149 = vector.multi_reduction <add>, %148, %cst_44 [1] : vector<8x32xf32> to vector<8xf32>
    %150 = vector.shape_cast %149 : vector<8xf32> to vector<8x1xf32>
    %cst_45 = arith.constant 3.200000e+01 : f32
    %151 = vector.broadcast %cst_45 : f32 to vector<8x1xf32>
    %152 = arith.divf %150, %151 : vector<8x1xf32>
    %153 = vector.broadcast %145 : vector<8x1xf32> to vector<8x32xf32>
    %154 = arith.subf %137, %153 : vector<8x32xf32>
    %cst_46 = arith.constant 9.99999974E-6 : f32
    %155 = vector.broadcast %cst_46 : f32 to vector<8x1xf32>
    %156 = arith.addf %152, %155 : vector<8x1xf32>
    %157 = math.rsqrt %156 : vector<8x1xf32>
    %158 = vector.broadcast %157 : vector<8x1xf32> to vector<8x32xf32>
    %159 = arith.mulf %154, %158 : vector<8x32xf32>
    %160 = vector.broadcast %139 : vector<1x32xf32> to vector<8x32xf32>
    %161 = arith.mulf %159, %160 : vector<8x32xf32>
    %162 = vector.broadcast %141 : vector<1x32xf32> to vector<8x32xf32>
    %163 = arith.addf %161, %162 : vector<8x32xf32>
    %164 = arith.truncf %163 : vector<8x32xf32> to vector<8x32xbf16>
    %c0_47 = arith.constant 0 : index
    %c0_48 = arith.constant 0 : index
    %c0_49 = arith.constant 0 : index
    %165 = vector.load %arg12[%c0_47, %c0_48, %c0_49] : memref<2x32x128xbf16, #tpu.memory_space<vmem>>, vector<1x32x128xbf16>
    %166 = vector.shape_cast %165 : vector<1x32x128xbf16> to vector<32x128xbf16>
    %cst_50 = arith.constant dense<0.000000e+00> : vector<8x128xf32>
    %167 = tpu.matmul %164, %166, %cst_50 {dimension_numbers = #tpu.dot_dimension_numbers<[1], [0], [0], [1], [0, 0, 1, 1], [], []>} : vector<8x32xbf16>, vector<32x128xbf16>, vector<8x128xf32> -> vector<8x128xf32>
    %c0_51 = arith.constant 0 : index
    %c0_52 = arith.constant 0 : index
    %c0_53 = arith.constant 0 : index
    %168 = vector.load %arg13[%c0_51, %c0_52, %c0_53] : memref<2x1x128xf32, #tpu.memory_space<vmem>>, vector<1x1x128xf32>
    %169 = vector.shape_cast %168 : vector<1x1x128xf32> to vector<1x128xf32>
    %170 = vector.broadcast %169 : vector<1x128xf32> to vector<8x128xf32>
    %171 = arith.addf %167, %170 : vector<8x128xf32>
    %172 = arith.mulf %171, %171 : vector<8x128xf32>
    %173 = arith.mulf %171, %172 : vector<8x128xf32>
    %cst_54 = arith.constant 4.471500e-02 : f32
    %174 = vector.broadcast %cst_54 : f32 to vector<8x128xf32>
    %175 = arith.mulf %174, %173 : vector<8x128xf32>
    %176 = arith.addf %171, %175 : vector<8x128xf32>
    %cst_55 = arith.constant 0.797884583 : f32
    %177 = vector.broadcast %cst_55 : f32 to vector<8x128xf32>
    %178 = arith.mulf %177, %176 : vector<8x128xf32>
    %179 = math.tanh %178 : vector<8x128xf32>
    %cst_56 = arith.constant 1.000000e+00 : f32
    %180 = vector.broadcast %cst_56 : f32 to vector<8x128xf32>
    %181 = arith.addf %180, %179 : vector<8x128xf32>
    %cst_57 = arith.constant 5.000000e-01 : f32
    %182 = vector.broadcast %cst_57 : f32 to vector<8x128xf32>
    %183 = arith.mulf %182, %181 : vector<8x128xf32>
    %184 = arith.mulf %171, %183 : vector<8x128xf32>
    %185 = arith.truncf %184 : vector<8x128xf32> to vector<8x128xbf16>
    %c0_58 = arith.constant 0 : index
    %c0_59 = arith.constant 0 : index
    %c0_60 = arith.constant 0 : index
    %186 = vector.load %arg14[%c0_58, %c0_59, %c0_60] : memref<2x128x32xbf16, #tpu.memory_space<vmem>>, vector<1x128x32xbf16>
    %187 = vector.shape_cast %186 : vector<1x128x32xbf16> to vector<128x32xbf16>
    %cst_61 = arith.constant dense<0.000000e+00> : vector<8x32xf32>
    %188 = tpu.matmul %185, %187, %cst_61 {dimension_numbers = #tpu.dot_dimension_numbers<[1], [0], [0], [1], [0, 0, 1, 1], [], []>} : vector<8x128xbf16>, vector<128x32xbf16>, vector<8x32xf32> -> vector<8x32xf32>
    %189 = arith.addf %137, %188 : vector<8x32xf32>
    %c0_62 = arith.constant 0 : index
    %c0_63 = arith.constant 0 : index
    %c0_64 = arith.constant 0 : index
    %190 = vector.load %arg15[%c0_62, %c0_63, %c0_64] : memref<2x1x32xf32, #tpu.memory_space<vmem>>, vector<1x1x32xf32>
    %191 = vector.shape_cast %190 : vector<1x1x32xf32> to vector<1x32xf32>
    %192 = vector.broadcast %191 : vector<1x32xf32> to vector<8x32xf32>
    %193 = arith.addf %189, %192 : vector<8x32xf32>
    %c1_65 = arith.constant 1 : index
    %c0_66 = arith.constant 0 : index
    %c0_67 = arith.constant 0 : index
    %194 = vector.load %arg4[%c1_65, %c0_66, %c0_67] : memref<2x1x32xf32, #tpu.memory_space<vmem>>, vector<1x1x32xf32>
    %195 = vector.shape_cast %194 : vector<1x1x32xf32> to vector<1x32xf32>
    %c1_68 = arith.constant 1 : index
    %c0_69 = arith.constant 0 : index
    %c0_70 = arith.constant 0 : index
    %196 = vector.load %arg5[%c1_68, %c0_69, %c0_70] : memref<2x1x32xf32, #tpu.memory_space<vmem>>, vector<1x1x32xf32>
    %197 = vector.shape_cast %196 : vector<1x1x32xf32> to vector<1x32xf32>
    %cst_71 = arith.constant dense<0.000000e+00> : vector<8xf32>
    %198 = vector.multi_reduction <add>, %193, %cst_71 [1] : vector<8x32xf32> to vector<8xf32>
    %199 = vector.shape_cast %198 : vector<8xf32> to vector<8x1xf32>
    %cst_72 = arith.constant 3.200000e+01 : f32
    %200 = vector.broadcast %cst_72 : f32 to vector<8x1xf32>
    %201 = arith.divf %199, %200 : vector<8x1xf32>
    %202 = vector.broadcast %201 : vector<8x1xf32> to vector<8x32xf32>
    %203 = arith.subf %193, %202 : vector<8x32xf32>
    %204 = arith.mulf %203, %203 : vector<8x32xf32>
    %cst_73 = arith.constant dense<0.000000e+00> : vector<8xf32>
    %205 = vector.multi_reduction <add>, %204, %cst_73 [1] : vector<8x32xf32> to vector<8xf32>
    %206 = vector.shape_cast %205 : vector<8xf32> to vector<8x1xf32>
    %cst_74 = arith.constant 3.200000e+01 : f32
    %207 = vector.broadcast %cst_74 : f32 to vector<8x1xf32>
    %208 = arith.divf %206, %207 : vector<8x1xf32>
    %209 = vector.broadcast %201 : vector<8x1xf32> to vector<8x32xf32>
    %210 = arith.subf %193, %209 : vector<8x32xf32>
    %cst_75 = arith.constant 9.99999974E-6 : f32
    %211 = vector.broadcast %cst_75 : f32 to vector<8x1xf32>
    %212 = arith.addf %208, %211 : vector<8x1xf32>
    %213 = math.rsqrt %212 : vector<8x1xf32>
    %214 = vector.broadcast %213 : vector<8x1xf32> to vector<8x32xf32>
    %215 = arith.mulf %210, %214 : vector<8x32xf32>
    %216 = vector.broadcast %195 : vector<1x32xf32> to vector<8x32xf32>
    %217 = arith.mulf %215, %216 : vector<8x32xf32>
    %218 = vector.broadcast %197 : vector<1x32xf32> to vector<8x32xf32>
    %219 = arith.addf %217, %218 : vector<8x32xf32>
    %220 = arith.truncf %219 : vector<8x32xf32> to vector<8x32xbf16>
    %c1_76 = arith.constant 1 : index
    %c0_77 = arith.constant 0 : index
    %c0_78 = arith.constant 0 : index
    %221 = vector.load %arg6[%c1_76, %c0_77, %c0_78] : memref<2x32x96xbf16, #tpu.memory_space<vmem>>, vector<1x32x96xbf16>
    %222 = vector.shape_cast %221 : vector<1x32x96xbf16> to vector<32x96xbf16>
    %cst_79 = arith.constant dense<0.000000e+00> : vector<8x96xf32>
    %223 = tpu.matmul %220, %222, %cst_79 {dimension_numbers = #tpu.dot_dimension_numbers<[1], [0], [0], [1], [0, 0, 1, 1], [], []>} : vector<8x32xbf16>, vector<32x96xbf16>, vector<8x96xf32> -> vector<8x96xf32>
    %c1_80 = arith.constant 1 : index
    %c0_81 = arith.constant 0 : index
    %c0_82 = arith.constant 0 : index
    %224 = vector.load %arg7[%c1_80, %c0_81, %c0_82] : memref<2x1x96xf32, #tpu.memory_space<vmem>>, vector<1x1x96xf32>
    %225 = vector.shape_cast %224 : vector<1x1x96xf32> to vector<1x96xf32>
    %226 = vector.broadcast %225 : vector<1x96xf32> to vector<8x96xf32>
    %227 = arith.addf %223, %226 : vector<8x96xf32>
    %228 = vector.extract_strided_slice %227 {offsets = [0, 0], sizes = [8, 32], strides = [1, 1]} : vector<8x96xf32> to vector<8x32xf32>
    %229 = vector.shape_cast %228 : vector<8x32xf32> to vector<8x4x8xf32>
    %230 = tpu.transpose %229, [1, 0, 2] : vector<8x4x8xf32> -> vector<4x8x8xf32>
    %231 = vector.extract_strided_slice %227 {offsets = [0, 32], sizes = [8, 32], strides = [1, 1]} : vector<8x96xf32> to vector<8x32xf32>
    %232 = vector.shape_cast %231 : vector<8x32xf32> to vector<8x4x8xf32>
    %233 = tpu.transpose %232, [1, 0, 2] : vector<8x4x8xf32> -> vector<4x8x8xf32>
    %234 = vector.extract_strided_slice %227 {offsets = [0, 64], sizes = [8, 32], strides = [1, 1]} : vector<8x96xf32> to vector<8x32xf32>
    %235 = vector.shape_cast %234 : vector<8x32xf32> to vector<8x4x8xf32>
    %236 = tpu.transpose %235, [1, 0, 2] : vector<8x4x8xf32> -> vector<4x8x8xf32>
    %237 = arith.truncf %230 : vector<4x8x8xf32> to vector<4x8x8xbf16>
    %238 = arith.truncf %233 : vector<4x8x8xf32> to vector<4x8x8xbf16>
    "tpu.trace_start"() <{level = 10 : i32, message = "hqd,hkd->hqk"}> : () -> ()
    %cst_83 = arith.constant dense<0.000000e+00> : vector<4x8x8xf32>
    %239 = tpu.matmul %237, %238, %cst_83 {dimension_numbers = #tpu.dot_dimension_numbers<[2], [2], [1], [1], [0, 0, 0, 1, 1, 1], [0], [0]>} : vector<4x8x8xbf16>, vector<4x8x8xbf16>, vector<4x8x8xf32> -> vector<4x8x8xf32>
    "tpu.trace_stop"() : () -> ()
    %240 = vector.broadcast %65 : vector<1x8x8xf32> to vector<4x8x8xf32>
    %241 = arith.addf %239, %240 : vector<4x8x8xf32>
    %cst_84 = arith.constant dense<0xFF800000> : vector<4x8xf32>
    %242 = vector.multi_reduction <maximumf>, %241, %cst_84 [2] : vector<4x8x8xf32> to vector<4x8xf32>
    %243 = vector.shape_cast %242 : vector<4x8xf32> to vector<4x8x1xf32>
    %244 = vector.broadcast %243 : vector<4x8x1xf32> to vector<4x8x8xf32>
    %245 = arith.subf %241, %244 : vector<4x8x8xf32>
    %246 = math.exp %245 : vector<4x8x8xf32>
    %cst_85 = arith.constant dense<0.000000e+00> : vector<4x8xf32>
    %247 = vector.multi_reduction <add>, %246, %cst_85 [2] : vector<4x8x8xf32> to vector<4x8xf32>
    %248 = vector.shape_cast %247 : vector<4x8xf32> to vector<4x8x1xf32>
    %249 = tpu.reciprocal %248 {approx = true} : vector<4x8x1xf32> -> vector<4x8x1xf32>
    %250 = vector.broadcast %249 : vector<4x8x1xf32> to vector<4x8x8xf32>
    %251 = arith.mulf %246, %250 : vector<4x8x8xf32>
    %252 = arith.truncf %251 : vector<4x8x8xf32> to vector<4x8x8xbf16>
    %253 = arith.truncf %236 : vector<4x8x8xf32> to vector<4x8x8xbf16>
    "tpu.trace_start"() <{level = 10 : i32, message = "hqk,hkd->hqd"}> : () -> ()
    %cst_86 = arith.constant dense<0.000000e+00> : vector<4x8x8xf32>
    %254 = tpu.matmul %252, %253, %cst_86 {dimension_numbers = #tpu.dot_dimension_numbers<[2], [1], [1], [2], [0, 0, 0, 1, 1, 2], [0], [0]>} : vector<4x8x8xbf16>, vector<4x8x8xbf16>, vector<4x8x8xf32> -> vector<4x8x8xf32>
    "tpu.trace_stop"() : () -> ()
    %255 = tpu.transpose %254, [1, 0, 2] : vector<4x8x8xf32> -> vector<8x4x8xf32>
    %256 = vector.shape_cast %255 : vector<8x4x8xf32> to vector<8x32xf32>
    %257 = arith.truncf %256 : vector<8x32xf32> to vector<8x32xbf16>
    %c1_87 = arith.constant 1 : index
    %c0_88 = arith.constant 0 : index
    %c0_89 = arith.constant 0 : index
    %258 = vector.load %arg8[%c1_87, %c0_88, %c0_89] : memref<2x32x32xbf16, #tpu.memory_space<vmem>>, vector<1x32x32xbf16>
    %259 = vector.shape_cast %258 : vector<1x32x32xbf16> to vector<32x32xbf16>
    %cst_90 = arith.constant dense<0.000000e+00> : vector<8x32xf32>
    %260 = tpu.matmul %257, %259, %cst_90 {dimension_numbers = #tpu.dot_dimension_numbers<[1], [0], [0], [1], [0, 0, 1, 1], [], []>} : vector<8x32xbf16>, vector<32x32xbf16>, vector<8x32xf32> -> vector<8x32xf32>
    %c1_91 = arith.constant 1 : index
    %c0_92 = arith.constant 0 : index
    %c0_93 = arith.constant 0 : index
    %261 = vector.load %arg9[%c1_91, %c0_92, %c0_93] : memref<2x1x32xf32, #tpu.memory_space<vmem>>, vector<1x1x32xf32>
    %262 = vector.shape_cast %261 : vector<1x1x32xf32> to vector<1x32xf32>
    %263 = vector.broadcast %262 : vector<1x32xf32> to vector<8x32xf32>
    %264 = arith.addf %260, %263 : vector<8x32xf32>
    %265 = arith.addf %193, %264 : vector<8x32xf32>
    %c1_94 = arith.constant 1 : index
    %c0_95 = arith.constant 0 : index
    %c0_96 = arith.constant 0 : index
    %266 = vector.load %arg10[%c1_94, %c0_95, %c0_96] : memref<2x1x32xf32, #tpu.memory_space<vmem>>, vector<1x1x32xf32>
    %267 = vector.shape_cast %266 : vector<1x1x32xf32> to vector<1x32xf32>
    %c1_97 = arith.constant 1 : index
    %c0_98 = arith.constant 0 : index
    %c0_99 = arith.constant 0 : index
    %268 = vector.load %arg11[%c1_97, %c0_98, %c0_99] : memref<2x1x32xf32, #tpu.memory_space<vmem>>, vector<1x1x32xf32>
    %269 = vector.shape_cast %268 : vector<1x1x32xf32> to vector<1x32xf32>
    %cst_100 = arith.constant dense<0.000000e+00> : vector<8xf32>
    %270 = vector.multi_reduction <add>, %265, %cst_100 [1] : vector<8x32xf32> to vector<8xf32>
    %271 = vector.shape_cast %270 : vector<8xf32> to vector<8x1xf32>
    %cst_101 = arith.constant 3.200000e+01 : f32
    %272 = vector.broadcast %cst_101 : f32 to vector<8x1xf32>
    %273 = arith.divf %271, %272 : vector<8x1xf32>
    %274 = vector.broadcast %273 : vector<8x1xf32> to vector<8x32xf32>
    %275 = arith.subf %265, %274 : vector<8x32xf32>
    %276 = arith.mulf %275, %275 : vector<8x32xf32>
    %cst_102 = arith.constant dense<0.000000e+00> : vector<8xf32>
    %277 = vector.multi_reduction <add>, %276, %cst_102 [1] : vector<8x32xf32> to vector<8xf32>
    %278 = vector.shape_cast %277 : vector<8xf32> to vector<8x1xf32>
    %cst_103 = arith.constant 3.200000e+01 : f32
    %279 = vector.broadcast %cst_103 : f32 to vector<8x1xf32>
    %280 = arith.divf %278, %279 : vector<8x1xf32>
    %281 = vector.broadcast %273 : vector<8x1xf32> to vector<8x32xf32>
    %282 = arith.subf %265, %281 : vector<8x32xf32>
    %cst_104 = arith.constant 9.99999974E-6 : f32
    %283 = vector.broadcast %cst_104 : f32 to vector<8x1xf32>
    %284 = arith.addf %280, %283 : vector<8x1xf32>
    %285 = math.rsqrt %284 : vector<8x1xf32>
    %286 = vector.broadcast %285 : vector<8x1xf32> to vector<8x32xf32>
    %287 = arith.mulf %282, %286 : vector<8x32xf32>
    %288 = vector.broadcast %267 : vector<1x32xf32> to vector<8x32xf32>
    %289 = arith.mulf %287, %288 : vector<8x32xf32>
    %290 = vector.broadcast %269 : vector<1x32xf32> to vector<8x32xf32>
    %291 = arith.addf %289, %290 : vector<8x32xf32>
    %292 = arith.truncf %291 : vector<8x32xf32> to vector<8x32xbf16>
    %c1_105 = arith.constant 1 : index
    %c0_106 = arith.constant 0 : index
    %c0_107 = arith.constant 0 : index
    %293 = vector.load %arg12[%c1_105, %c0_106, %c0_107] : memref<2x32x128xbf16, #tpu.memory_space<vmem>>, vector<1x32x128xbf16>
    %294 = vector.shape_cast %293 : vector<1x32x128xbf16> to vector<32x128xbf16>
    %cst_108 = arith.constant dense<0.000000e+00> : vector<8x128xf32>
    %295 = tpu.matmul %292, %294, %cst_108 {dimension_numbers = #tpu.dot_dimension_numbers<[1], [0], [0], [1], [0, 0, 1, 1], [], []>} : vector<8x32xbf16>, vector<32x128xbf16>, vector<8x128xf32> -> vector<8x128xf32>
    %c1_109 = arith.constant 1 : index
    %c0_110 = arith.constant 0 : index
    %c0_111 = arith.constant 0 : index
    %296 = vector.load %arg13[%c1_109, %c0_110, %c0_111] : memref<2x1x128xf32, #tpu.memory_space<vmem>>, vector<1x1x128xf32>
    %297 = vector.shape_cast %296 : vector<1x1x128xf32> to vector<1x128xf32>
    %298 = vector.broadcast %297 : vector<1x128xf32> to vector<8x128xf32>
    %299 = arith.addf %295, %298 : vector<8x128xf32>
    %300 = arith.mulf %299, %299 : vector<8x128xf32>
    %301 = arith.mulf %299, %300 : vector<8x128xf32>
    %cst_112 = arith.constant 4.471500e-02 : f32
    %302 = vector.broadcast %cst_112 : f32 to vector<8x128xf32>
    %303 = arith.mulf %302, %301 : vector<8x128xf32>
    %304 = arith.addf %299, %303 : vector<8x128xf32>
    %cst_113 = arith.constant 0.797884583 : f32
    %305 = vector.broadcast %cst_113 : f32 to vector<8x128xf32>
    %306 = arith.mulf %305, %304 : vector<8x128xf32>
    %307 = math.tanh %306 : vector<8x128xf32>
    %cst_114 = arith.constant 1.000000e+00 : f32
    %308 = vector.broadcast %cst_114 : f32 to vector<8x128xf32>
    %309 = arith.addf %308, %307 : vector<8x128xf32>
    %cst_115 = arith.constant 5.000000e-01 : f32
    %310 = vector.broadcast %cst_115 : f32 to vector<8x128xf32>
    %311 = arith.mulf %310, %309 : vector<8x128xf32>
    %312 = arith.mulf %299, %311 : vector<8x128xf32>
    %313 = arith.truncf %312 : vector<8x128xf32> to vector<8x128xbf16>
    %c1_116 = arith.constant 1 : index
    %c0_117 = arith.constant 0 : index
    %c0_118 = arith.constant 0 : index
    %314 = vector.load %arg14[%c1_116, %c0_117, %c0_118] : memref<2x128x32xbf16, #tpu.memory_space<vmem>>, vector<1x128x32xbf16>
    %315 = vector.shape_cast %314 : vector<1x128x32xbf16> to vector<128x32xbf16>
    %cst_119 = arith.constant dense<0.000000e+00> : vector<8x32xf32>
    %316 = tpu.matmul %313, %315, %cst_119 {dimension_numbers = #tpu.dot_dimension_numbers<[1], [0], [0], [1], [0, 0, 1, 1], [], []>} : vector<8x128xbf16>, vector<128x32xbf16>, vector<8x32xf32> -> vector<8x32xf32>
    %317 = arith.addf %265, %316 : vector<8x32xf32>
    %c1_120 = arith.constant 1 : index
    %c0_121 = arith.constant 0 : index
    %c0_122 = arith.constant 0 : index
    %318 = vector.load %arg15[%c1_120, %c0_121, %c0_122] : memref<2x1x32xf32, #tpu.memory_space<vmem>>, vector<1x1x32xf32>
    %319 = vector.shape_cast %318 : vector<1x1x32xf32> to vector<1x32xf32>
    %320 = vector.broadcast %319 : vector<1x32xf32> to vector<8x32xf32>
    %321 = arith.addf %317, %320 : vector<8x32xf32>
    %c0_123 = arith.constant 0 : index
    %c0_124 = arith.constant 0 : index
    %322 = vector.load %arg16[%c0_123, %c0_124] : memref<1x32xf32, #tpu.memory_space<vmem>>, vector<1x32xf32>
    %c0_125 = arith.constant 0 : index
    %c0_126 = arith.constant 0 : index
    %323 = vector.load %arg17[%c0_125, %c0_126] : memref<1x32xf32, #tpu.memory_space<vmem>>, vector<1x32xf32>
    %cst_127 = arith.constant dense<0.000000e+00> : vector<8xf32>
    %324 = vector.multi_reduction <add>, %321, %cst_127 [1] : vector<8x32xf32> to vector<8xf32>
    %325 = vector.shape_cast %324 : vector<8xf32> to vector<8x1xf32>
    %cst_128 = arith.constant 3.200000e+01 : f32
    %326 = vector.broadcast %cst_128 : f32 to vector<8x1xf32>
    %327 = arith.divf %325, %326 : vector<8x1xf32>
    %328 = vector.broadcast %327 : vector<8x1xf32> to vector<8x32xf32>
    %329 = arith.subf %321, %328 : vector<8x32xf32>
    %330 = arith.mulf %329, %329 : vector<8x32xf32>
    %cst_129 = arith.constant dense<0.000000e+00> : vector<8xf32>
    %331 = vector.multi_reduction <add>, %330, %cst_129 [1] : vector<8x32xf32> to vector<8xf32>
    %332 = vector.shape_cast %331 : vector<8xf32> to vector<8x1xf32>
    %cst_130 = arith.constant 3.200000e+01 : f32
    %333 = vector.broadcast %cst_130 : f32 to vector<8x1xf32>
    %334 = arith.divf %332, %333 : vector<8x1xf32>
    %335 = vector.broadcast %327 : vector<8x1xf32> to vector<8x32xf32>
    %336 = arith.subf %321, %335 : vector<8x32xf32>
    %cst_131 = arith.constant 9.99999974E-6 : f32
    %337 = vector.broadcast %cst_131 : f32 to vector<8x1xf32>
    %338 = arith.addf %334, %337 : vector<8x1xf32>
    %339 = math.rsqrt %338 : vector<8x1xf32>
    %340 = vector.broadcast %339 : vector<8x1xf32> to vector<8x32xf32>
    %341 = arith.mulf %336, %340 : vector<8x32xf32>
    %342 = vector.broadcast %322 : vector<1x32xf32> to vector<8x32xf32>
    %343 = arith.mulf %341, %342 : vector<8x32xf32>
    %344 = vector.broadcast %323 : vector<1x32xf32> to vector<8x32xf32>
    %345 = arith.addf %343, %344 : vector<8x32xf32>
    %346 = arith.truncf %345 : vector<8x32xf32> to vector<8x32xbf16>
    %c0_132 = arith.constant 0 : index
    %c0_133 = arith.constant 0 : index
    %347 = vector.load %arg2[%c0_132, %c0_133] : memref<128x32xbf16, #tpu.memory_space<vmem>>, vector<128x32xbf16>
    %cst_134 = arith.constant dense<0.000000e+00> : vector<8x128xf32>
    %348 = tpu.matmul %346, %347, %cst_134 {dimension_numbers = #tpu.dot_dimension_numbers<[1], [1], [0], [0], [0, 0, 1, 0], [], []>} : vector<8x32xbf16>, vector<128x32xbf16>, vector<8x128xf32> -> vector<8x128xf32>
    %c0_135 = arith.constant 0 : index
    %c0_136 = arith.constant 0 : index
    %c0_137 = arith.constant 0 : index
    %349 = vector.load %arg18[%c0_135, %c0_136, %c0_137] : memref<1x8x128xf32, #tpu.memory_space<vmem>>, vector<1x8x128xf32>
    %350 = vector.shape_cast %349 : vector<1x8x128xf32> to vector<8x128xf32>
    %351 = vector.shape_cast %348 : vector<8x128xf32> to vector<1x8x128xf32>
    tpu.vector_store %arg18[%c0_135, %c0_136, %c0_137], %351 {strides = array<i32>} : memref<1x8x128xf32, #tpu.memory_space<vmem>>, vector<1x8x128xf32>,
    return
  }
  func.func @transform_0(%arg0: i32, %arg1: memref<2x8xi32, #tpu.memory_space<smem>>) -> (i32, i32) {
    %c0_i32 = arith.constant 0 : i32
    %c0_i32_0 = arith.constant 0 : i32
    %c0_i32_1 = arith.constant 0 : i32
    return %c0_i32, %c0_i32_0 : i32, i32
  }
  func.func @transform_1(%arg0: i32, %arg1: memref<2x8xi32, #tpu.memory_space<smem>>) -> (i32, i32) {
    %c0_i32 = arith.constant 0 : i32
    %c0_i32_0 = arith.constant 0 : i32
    %c0_i32_1 = arith.constant 0 : i32
    return %c0_i32, %c0_i32_0 : i32, i32
  }
  func.func @transform_2(%arg0: i32, %arg1: memref<2x8xi32, #tpu.memory_space<smem>>) -> (i32, i32, i32) {
    %c0_i32 = arith.constant 0 : i32
    %c0_i32_0 = arith.constant 0 : i32
    %c0_i32_1 = arith.constant 0 : i32
    %c0_i32_2 = arith.constant 0 : i32
    return %c0_i32, %c0_i32_0, %c0_i32_1 : i32, i32, i32
  }
  func.func @transform_3(%arg0: i32, %arg1: memref<2x8xi32, #tpu.memory_space<smem>>) -> (i32, i32, i32) {
    %c0_i32 = arith.constant 0 : i32
    %c0_i32_0 = arith.constant 0 : i32
    %c0_i32_1 = arith.constant 0 : i32
    %c0_i32_2 = arith.constant 0 : i32
    return %c0_i32, %c0_i32_0, %c0_i32_1 : i32, i32, i32
  }
  func.func @transform_4(%arg0: i32, %arg1: memref<2x8xi32, #tpu.memory_space<smem>>) -> (i32, i32, i32) {
    %c0_i32 = arith.constant 0 : i32
    %c0_i32_0 = arith.constant 0 : i32
    %c0_i32_1 = arith.constant 0 : i32
    %c0_i32_2 = arith.constant 0 : i32
    return %c0_i32, %c0_i32_0, %c0_i32_1 : i32, i32, i32
  }
  func.func @transform_5(%arg0: i32, %arg1: memref<2x8xi32, #tpu.memory_space<smem>>) -> (i32, i32, i32) {
    %c0_i32 = arith.constant 0 : i32
    %c0_i32_0 = arith.constant 0 : i32
    %c0_i32_1 = arith.constant 0 : i32
    %c0_i32_2 = arith.constant 0 : i32
    return %c0_i32, %c0_i32_0, %c0_i32_1 : i32, i32, i32
  }
  func.func @transform_6(%arg0: i32, %arg1: memref<2x8xi32, #tpu.memory_space<smem>>) -> (i32, i32, i32) {
    %c0_i32 = arith.constant 0 : i32
    %c0_i32_0 = arith.constant 0 : i32
    %c0_i32_1 = arith.constant 0 : i32
    %c0_i32_2 = arith.constant 0 : i32
    return %c0_i32, %c0_i32_0, %c0_i32_1 : i32, i32, i32
  }
  func.func @transform_7(%arg0: i32, %arg1: memref<2x8xi32, #tpu.memory_space<smem>>) -> (i32, i32, i32) {
    %c0_i32 = arith.constant 0 : i32
    %c0_i32_0 = arith.constant 0 : i32
    %c0_i32_1 = arith.constant 0 : i32
    %c0_i32_2 = arith.constant 0 : i32
    return %c0_i32, %c0_i32_0, %c0_i32_1 : i32, i32, i32
  }
  func.func @transform_8(%arg0: i32, %arg1: memref<2x8xi32, #tpu.memory_space<smem>>) -> (i32, i32, i32) {
    %c0_i32 = arith.constant 0 : i32
    %c0_i32_0 = arith.constant 0 : i32
    %c0_i32_1 = arith.constant 0 : i32
    %c0_i32_2 = arith.constant 0 : i32
    return %c0_i32, %c0_i32_0, %c0_i32_1 : i32, i32, i32
  }
  func.func @transform_9(%arg0: i32, %arg1: memref<2x8xi32, #tpu.memory_space<smem>>) -> (i32, i32, i32) {
    %c0_i32 = arith.constant 0 : i32
    %c0_i32_0 = arith.constant 0 : i32
    %c0_i32_1 = arith.constant 0 : i32
    %c0_i32_2 = arith.constant 0 : i32
    return %c0_i32, %c0_i32_0, %c0_i32_1 : i32, i32, i32
  }
  func.func @transform_10(%arg0: i32, %arg1: memref<2x8xi32, #tpu.memory_space<smem>>) -> (i32, i32, i32) {
    %c0_i32 = arith.constant 0 : i32
    %c0_i32_0 = arith.constant 0 : i32
    %c0_i32_1 = arith.constant 0 : i32
    %c0_i32_2 = arith.constant 0 : i32
    return %c0_i32, %c0_i32_0, %c0_i32_1 : i32, i32, i32
  }
  func.func @transform_11(%arg0: i32, %arg1: memref<2x8xi32, #tpu.memory_space<smem>>) -> (i32, i32, i32) {
    %c0_i32 = arith.constant 0 : i32
    %c0_i32_0 = arith.constant 0 : i32
    %c0_i32_1 = arith.constant 0 : i32
    %c0_i32_2 = arith.constant 0 : i32
    return %c0_i32, %c0_i32_0, %c0_i32_1 : i32, i32, i32
  }
  func.func @transform_12(%arg0: i32, %arg1: memref<2x8xi32, #tpu.memory_space<smem>>) -> (i32, i32, i32) {
    %c0_i32 = arith.constant 0 : i32
    %c0_i32_0 = arith.constant 0 : i32
    %c0_i32_1 = arith.constant 0 : i32
    %c0_i32_2 = arith.constant 0 : i32
    return %c0_i32, %c0_i32_0, %c0_i32_1 : i32, i32, i32
  }
  func.func @transform_13(%arg0: i32, %arg1: memref<2x8xi32, #tpu.memory_space<smem>>) -> (i32, i32, i32) {
    %c0_i32 = arith.constant 0 : i32
    %c0_i32_0 = arith.constant 0 : i32
    %c0_i32_1 = arith.constant 0 : i32
    %c0_i32_2 = arith.constant 0 : i32
    return %c0_i32, %c0_i32_0, %c0_i32_1 : i32, i32, i32
  }
  func.func @transform_14(%arg0: i32, %arg1: memref<2x8xi32, #tpu.memory_space<smem>>) -> (i32, i32) {
    %c0_i32 = arith.constant 0 : i32
    %c0_i32_0 = arith.constant 0 : i32
    %c0_i32_1 = arith.constant 0 : i32
    return %c0_i32, %c0_i32_0 : i32, i32
  }
  func.func @transform_15(%arg0: i32, %arg1: memref<2x8xi32, #tpu.memory_space<smem>>) -> (i32, i32) {
    %c0_i32 = arith.constant 0 : i32
    %c0_i32_0 = arith.constant 0 : i32
    %c0_i32_1 = arith.constant 0 : i32
    return %c0_i32, %c0_i32_0 : i32, i32
  }
  func.func @transform_16(%arg0: i32, %arg1: memref<2x8xi32, #tpu.memory_space<smem>>) -> (i32, i32, i32) {
    %c0_i32 = arith.constant 0 : i32
    %c0_i32_0 = arith.constant 0 : i32
    %c0_i32_1 = arith.constant 0 : i32
    return %arg0, %c0_i32, %c0_i32_0 : i32, i32, i32
  }
}

</mosaic_0001>

<bundles_post_ra>
// kernel: gpt2_forward.1
= control target key start
LH: loop header
LB: loop body
LE: loop exit
PB: predicated region body
PF: predicated region fallthrough
CT: control target
= control target key end

     0   :  { %s3324_s27 = smov [#allocation3]   ;;  %s4242_s0 = inlined_call_operand.vmem [shape: s32[2,8], index: 0, kind: input, shape index: {}]   ;;  %s4243_s1 = inlined_call_operand.vmem [shape: bf16[128,32], index: 1, kind: input, shape index: {}]   ;;  %s4244_s2 = inlined_call_operand.vmem [shape: f32[8,32], index: 2, kind: input, shape index: {}]   ;;  %s4245_s3 = inlined_call_operand.vmem [shape: f32[2,1,32], index: 3, kind: input, shape index: {}]   ;;  %s4246_s4 = inlined_call_operand.vmem [shape: f32[2,1,32], index: 4, kind: input, shape index: {}]   ;;  %s4247_s5 = inlined_call_operand.vmem [shape: bf16[2,32,96], index: 5, kind: input, shape index: {}]   ;;  %s4248_s6 = inlined_call_operand.vmem [shape: f32[2,1,96], index: 6, kind: input, shape index: {}]   ;;  %s4249_s7 = inlined_call_operand.vmem [shape: bf16[2,32,32], index: 7, kind: input, shape index: {}]   ;;  %s4250_s8 = inlined_call_operand.vmem [shape: f32[2,1,32], index: 8, kind: input, shape index: {}]   ;;  %s4251_s9 = inlined_call_operand.vmem [shape: f32[2,1,32], index: 9, kind: input, shape index: {}]   ;;  %s4252_s10 = inlined_call_operand.vmem [shape: f32[2,1,32], index: 10, kind: input, shape index: {}]   ;;  %s4253_s11 = inlined_call_operand.vmem [shape: bf16[2,32,128], index: 11, kind: input, shape index: {}]   ;;  %s4254_s12 = inlined_call_operand.vmem [shape: f32[2,1,128], index: 12, kind: input, shape index: {}]   ;;  %s4255_s13 = inlined_call_operand.vmem [shape: bf16[2,128,32], index: 13, kind: input, shape index: {}]   ;;  %s4256_s14 = inlined_call_operand.vmem [shape: f32[2,1,32], index: 14, kind: input, shape index: {}]   ;;  %s4257_s15 = inlined_call_operand.vmem [shape: f32[1,32], index: 15, kind: input, shape index: {}]   ;;  %s4258_s16 = inlined_call_operand.vmem [shape: f32[1,32], index: 16, kind: input, shape index: {}]   ;;  %s4259_s17 = inlined_call_operand.hbm [shape: f32[2,8,128], index: 17, kind: output, shape index: {}]  }
   0x1   :  { %4278 = sst [smem:[#allocation15_spill]] %s4242_s0 }
   0x2   :  { %4279 = sst [smem:[#allocation16_spill]] %s4243_s1 }
   0x3   :  { %4280 = sst [smem:[#allocation17_spill]] %s4244_s2 }
   0x4   :  { %4281 = sst [smem:[#allocation18_spill]] %s4245_s3 }
   0x5   :  { %4282 = sst [smem:[#allocation19_spill]] %s4252_s10 }
   0x6   :  { %4283 = sst [smem:[#allocation20_spill]] %s4259_s17 }
   0x7   :  { %s4284_s26 = sld [smem:[#allocation15_spill]] }
   0xd   :  { %s23_s10 = sshll.u32 %s4284_s26, 4  ;;  %s24_s10 = int_to_ptr.vmem [resolvable:$true] %s23_s10 }
   0xe   :  { %26 = dma.vmem_to_smem %s24_s10, 32, %s3324_s27, [#allocation2] }
   0xf   :  { %3302 = dma.done.wait [#allocation2], 32 }
  0x10   :  { %3303 = vsyncadd [#allocation2], 4294967264 }
  0x11   :  { %29 = sfence }
  0x12   :  { %30 = vsyncpa [#allocation5], 0 }
  0x13   :  { %32 = vsyncpa [#allocation5 + $0x1], 0  ;;  %s3431_s28 = smov 0   ;;  %s3433_s29 = smov 0  }
  0x14   :  { %s3435_s0 = smov 0   ;;  %s3437_s30 = smov 0  }
  0x15 LB: > { %4285 = sst [smem:[#allocation8_spill]] %s3310_s28  ;;  %s3452_s10 = sadd.s32 4294967295, %s3322_s30   ;;  %s3322_s30 = sphi %s3437_s30, %s4308_s30   ;;  %s3318_s0 = sphi %s3435_s0, %s4310_s0   ;;  %s3314_s29 = sphi %s3433_s29, %s4312_s29   ;;  %s3310_s28 = sphi %s3431_s28, %s4311_s28  }
  0x16   : > { %4286 = sst [smem:[#allocation9_spill]] %s3318_s0  ;;  %s2796_s18 = sadd.s32 4294967294, %s3322_s30  }
  0x17   : > { %4287 = sst [smem:[#allocation10_spill]] %s3322_s30  ;;  %s3456_s19 = sadd.s32 1, %s3322_s30  }
  0x18   : > { %4288 = sst [smem:[#allocation11_spill]] %s3456_s19  ;;  %s381_s1 = sadd.s32 1, %s3318_s0 }
  0x19   : > { %s378_s20 = ssub.s32 %s3322_s30, %s3456_s19  ;;  %p391_p0 = scmp.ne.s32.totalorder %s3318_s0, %s3314_s29 }
  0x1a   : > { %p379_p1 = scmp.eq.s32.totalorder %s378_s20, 0  ;;  %p392_p2 = scmp.eq.s32.totalorder %s3452_s10, 1 }
  0x1b   : > { %p397_p3 = scmp.ne.s32.totalorder %s3314_s29, %s3310_s28  ;;  %p398_p4 = scmp.eq.s32.totalorder %s2796_s18, 1 }
  0x1c   : > { %s3467_s21 = scalar_select %p379_p1, %s3318_s0, %s381_s1  }
  0x1d   : > { %p3469_p5 = por %p392_p2, %p391_p0  ;;  %p3473_p6 = por %p398_p4, %p397_p3 }
  0x1e   : > { %4289 = sst [smem:[#allocation12_spill]] %s3467_s21  ;;  %p2798_p7 = scmp.ge.s32.totalorder %s3322_s30, 1 }
  0x1f   : > { %s4290_s22 = scalar_select %p3469_p5, 1, 0 }
  0x20   : > { %s4292_s23 = scalar_select %p3473_p6, 1, 0 }
  0x21   : > { %4291 = sst [smem:[#allocation13_spill]] %s4290_s22  ;;  %p464_p8 = scmp.lt.s32.totalorder %s3322_s30, 3 }
  0x22   : > { %4293 = sst [smem:[#allocation14_spill]] %s4292_s23 }
  0x23   : > { %p465_p9 = pnand %p2798_p7, %p464_p8 }
  0x24   : > { %s4294_s26 = sld [smem:[#allocation16_spill]] (!%p465_p9)  ;;  %s3483_s27 = sshll.u32 (!%p465_p9), %s3452_s10, 7 }
  0x25   : > { %468 = sbr.rel (%p465_p9) target bundleno = 4677 (0x1245), region = 84  ;;  %s516_s18 = sld [smem:[#allocation3 + %s3483_s27]] (!%p465_p9) }
  0x26   : > { %s520_s1 = sadd.s32 (!%p465_p9), 1, %s3483_s27  ;;  %s525_s25 = sadd.s32 (!%p465_p9), 2, %s3483_s27 }
  0x27   : > { %s521_s24 = sld [smem:[#allocation3 + %s520_s1]] (!%p465_p9)  ;;  %s530_s19 = sadd.s32 (!%p465_p9), 3, %s3483_s27 }
  0x28   : > { %s526_s0 = sld [smem:[#allocation3 + %s525_s25]] (!%p465_p9)  ;;  %s535_s28 = sadd.s32 (!%p465_p9), 4, %s3483_s27 }
  0x29   : > { %s531_s23 = sld [smem:[#allocation3 + %s530_s19]] (!%p465_p9)  ;;  %s540_s20 = sadd.s32 (!%p465_p9), 5, %s3483_s27 }
  0x2a   : > { %v3050_v0 = vld [vmem:[%s4294_s26 + $0x38] sm:$0xff]  ;;  %v510_v1 = vlaneseq  ;;  %v3049_v2 = vld [vmem:[%s4294_s26 + $0x30] sm:$0xff]  ;;  %v3048_v5 = vld [vmem:[%s4294_s26 + $0x28] sm:$0xff]  ;;  %s536_s21 = sld [smem:[#allocation3 + %s535_s28]]  ;;  %s545_s22 = sadd.s32 6, %s3483_s27  ;;  %vm640_vm11 = vcmask 261120  }
  0x2b   : > { %623 = vmatpush.bf16.msra.mxu1 %v3050_v0  ;;  %s541_s1 = sld [smem:[#allocation3 + %s540_s20]]  ;;  %v517_v6 = vstv %s516_s18  ;;  %v3047_v7 = vld [vmem:[%s4294_s26 + $0x20] sm:$0xff]  ;;  %s550_s28 = sadd.s32 7, %s3483_s27  ;;  %v3046_v16 = vld [vmem:[%s4294_s26 + $0x18] sm:$0xff]  ;;  %v3045_v19 = vld [vmem:[%s4294_s26 + $0x10] sm:$0xff]  ;;  %v3326_v33 = vmov 32.0  }
  0x2c   : > { %v3490_v3 = vshrl.u32 %v510_v1, 7  ;;  %v3494_v4 = vand.u32 127, %v510_v1  ;;  %s546_s17 = sld [smem:[#allocation3 + %s545_s22]]  ;;  %v3044_v24 = vld [vmem:[%s4294_s26 + $0x8] sm:$0xff]  ;;  %v3043_v26 = vld [vmem:[%s4294_s26] sm:$0xff]  ;;  %3198 = vrcp.f32 %v3326_v33  ;;  %s3328_s20 = smov 120  }
  0x2d   : > { %v522_v9 = vstv %s521_s24  ;;  %s551_s18 = sld [smem:[#allocation3 + %s550_s28]]  ;;  %v3325_v27 = vmov 1.0|1.0   ;;  %v3052_v45 = vld [vmem:[%s4247_s5 + $0x8] sm:$0xff]  ;;  %v3051_v46 = vld [vmem:[%s4247_s5] sm:$0xff]  ;;  %s4276_s30 = smov 64  }
  0x2e   : > { %vm514_vm0 = vcmp.eq.s32.totalorder %v3490_v3, 0  ;;  %vm519_vm1 = vcmp.eq.s32.totalorder %v3490_v3, 1  ;;  %vm636_vm2 = vcmp.ge.s32.totalorder %v3490_v3, %v3494_v4  ;;  %vm524_vm3 = vcmp.eq.s32.totalorder %v3490_v3, 2  ;;  %s4295_s2 = sld [smem:[#allocation17_spill]]  ;;  %708 = vmatpush.bf16.msra.mxu2 %v3052_v45  ;;  %v3181_v59 = vld [vmem:[%s4246_s4] ss:$0 sm:$0xff] }
  0x2f   : > { %624 = vmatpush.bf16.msra.mxu1 %v3049_v2  ;;  %vm529_vm4 = vcmp.eq.s32.totalorder %v3490_v3, 3  ;;  %vm534_vm5 = vcmp.eq.s32.totalorder %v3490_v3, 4  ;;  %v518_v8 = vsel %vm514_vm0, %v517_v6, 0  ;;  %v527_v11 = vstv %s526_s0  ;;  %s4296_s3 = sld [smem:[#allocation18_spill]]  ;;  %v3182_v63 = vld [vmem:[%s4248_s6] ss:$0 sm:$0xff] }
  0x30   : > { %v523_v10 = vsel %vm519_vm1, %v522_v9, %v518_v8  ;;  %v532_v13 = vstv %s531_s23  ;;  %v537_v15 = vstv %s536_s21  ;;  %vm539_vm6 = vcmp.eq.s32.totalorder %v3490_v3, 5  ;;  %s3327_s21 = smov 104   ;;  %s4273_s19 = smov 16  }
  0x31   : > { %v528_v12 = vsel %vm524_vm3, %v527_v11, %v523_v10  ;;  %v542_v18 = vstv %s541_s1  ;;  %vm544_vm7 = vcmp.eq.s32.totalorder %v3490_v3, 6  ;;  %vm549_vm8 = vcmp.eq.s32.totalorder %v3490_v3, 7  ;;  %s3329_s1 = smov 112   ;;  %s4272_s28 = smov 8  }
  0x32   : > { %v533_v14 = vsel %vm529_vm4, %v532_v13, %v528_v12  ;;  %v547_v21 = vstv %s546_s17  ;;  %v3199_v34 = vpop.eup %3198  ;;  %709 = vmatpush.bf16.msra.mxu2 %v3051_v46  ;;  %s4274_s17 = smov 96   ;;  %v3331_v11 = vmov 1983009808   ;;  %vm726_vm0 = vcmask 1047556   ;;  %s4297_s23 = sld [smem:[#allocation19_spill]] }
  0x33   : > { %625 = vmatpush.bf16.msra.mxu1 %v3048_v5  ;;  %v538_v17 = vsel %vm534_vm5, %v537_v15, %v533_v14  ;;  %v552_v23 = vstv %s551_s18  ;;  %v645_v35 = vmul.f32 32.0, %v3199_v34  ;;  %vm649_vm12 = vweird.f32 %v3199_v34  ;;  %s4271_s18 = smov 24   ;;  %s4298_s27 = smov 64  }
  0x34   : > { %v543_v20 = vsel %vm539_vm6, %v542_v18, %v538_v17  ;;  %v574_v28 = vld [vmem:[%s4295_s2] sm:$0xff]  ;;  %v731_v12 = vunpack.c.l.s4 %v3331_v11  ;;  %vm1088_vm1 = vcmask 64512   ;;  %vm1417_vm3 = vcmask 130048   ;;  %s4299_s0 = smov 96  }
  0x35   : > { %v548_v22 = vsel %vm544_vm7, %v547_v21, %v543_v20  ;;  %v646_v36 = vsub.f32 1.0, %v645_v35  ;;  %v3180_v56 = vld [vmem:[%s4296_s3] ss:$0 sm:$0xff]  ;;  %vm1419_vm4 = vcmask 195584  }
  0x36   : > { %v553_v25 = vsel %vm549_vm8, %v552_v23, %v548_v22 }
  0x37   : > { %626 = vmatpush.bf16.msra.mxu1 %v3047_v7  ;;  %vm554_vm9 = vcmp.eq.s32.totalorder %v553_v25, %v3494_v4  ;;  %v647_v37 = vmul.f32 %v3199_v34, %v646_v36  ;;  %v3332_v25 = vmov 1934713408  }
  0x38   : > { %vm2834_vm10 = vmpackc.low %vm554_vm9, %vm554_vm9 }
  0x39   : > { %v648_v38 = vadd.f32 %v3199_v34, %v647_v37 }
  0x3b   : > { %627 = vmatpush.bf16.msra.mxu1 %v3046_v16  ;;  %v3540_v39 = vsel %vm649_vm12, %v3199_v34, %v648_v38  ;;  %v3575_v16 = vunpack.c.0.s8 %v731_v12 }
  0x3f   : > { %628 = vmatpush.bf16.msra.mxu1 %v3045_v19 }
  0x43   : > { %629 = vmatpush.bf16.msra.mxu1 %v3044_v24 }
  0x47   : > { %630 = vmatpush.bf16.msra.mxu1 %v3043_v26  ;;  %v755_v26 = vunpack.c.l.s4 %v3332_v25 }
  0x4a   : > { %2835 = vmatmul.msk.bf16.vlgmr.msra.gmra.mxu1 %vm2834_vm10, %v3325_v27 }
  0xc7   : > { %v632_v29 = vpop.f32.mrf.mxu1 }
  0xc8   : > { %v3536_v30 = vadd.f32 %v632_v29, %v574_v28 }
  0xca   : > { %v641_v31 = vsel %vm640_vm11, %v3536_v30, 0.0 }
  0xcb   : > { %642 = vadd.xlane.f32.xlu0 %v641_v31 }
  0xcf   : > { %v634_v32 = vpop.f32.mrf.mxu1 }
  0xd0   : > { %v3585_v32 = vunpack.c.0.s8 %v755_v26 }
 0x13e   : > { %v643_v40 = vpop.xlane.xlu0 %642 }
 0x13f   : > { %v651_v41 = vmul.f32 %v3540_v39, %v643_v40 }
 0x141   : > { %v652_v42 = vsub.f32 %v3536_v30, %v651_v41 }
 0x143   : > { %v653_v43 = vmul.f32 %v652_v42, %v652_v42 }
 0x145   : > { %v654_v44 = vsel %vm640_vm11, %v653_v43, 0.0 }
 0x146   : > { %655 = vadd.xlane.f32.xlu0 %v654_v44 }
 0x1b9   : > { %v656_v47 = vpop.xlane.xlu0 %655 }
 0x1ba   : > { %v657_v48 = vmul.f32 %v656_v47, %v3540_v39 }
 0x1bc   : > { %v658_v49 = vadd.f32 1e-05, %v657_v48 }
 0x1be   : > { %3200 = vrsqrt.f32 %v658_v49  ;;  %vm665_vm14 = vweird.f32 %v658_v49 }
 0x1c4   : > { %v3201_v50 = vpop.eup %3200 }
 0x1c5   : > { %v660_v51 = vmul.f32 %v3201_v50, %v658_v49  ;;  %vm666_vm13 = vweird.f32 %v3201_v50 }
 0x1c6   : > { %vm667_vm15 = vmor %vm665_vm14, %vm666_vm13 }
 0x1c7   : > { %v661_v52 = vmul.f32 %v3201_v50, %v660_v51 }
 0x1c9   : > { %v662_v53 = vmul.f32 0.5, %v661_v52 }
 0x1cb   : > { %v663_v54 = vsub.f32 1.5, %v662_v53 }
 0x1cd   : > { %v664_v55 = vmul.f32 %v3201_v50, %v663_v54 }
 0x1cf   : > { %v668_v57 = vsel %vm667_vm15, %v3201_v50, %v664_v55 }
 0x1d0   : > { %v669_v58 = vmul.f32 %v668_v57, %v652_v42 }
 0x1d2   : > { %v673_v60 = vmul.f32 %v3180_v56, %v669_v58 }
 0x1d4   : > { %v677_v61 = vadd.f32 %v3181_v59, %v673_v60 }
 0x1d6   : > { %v678_v62 = vpack.c.bf16 %v677_v61, %v677_v61 }
 0x1d8   : > { %2844 = vmatmul.msk.bf16.vlgmr.msra.gmra.mxu2 %vm640_vm11, %v678_v62 }
 0x25b   : > { %v711_v0 = vpop.f32.mrf.mxu2 }
 0x25c   : > { %v712_v1 = vadd.f32 %v3182_v63, %v711_v0 }
 0x25e   : > { %722 = vrot.lane.b32.xlu2 %v712_v1, %s3327_s21  ;;  %716 = vrot.lane.b32.xlu1 %v712_v1, %s3328_s20  ;;  %v728_v13 = vrot.slane %v712_v1, 4 }
 0x263   : > { %v713_v2 = vpop.f32.mrf.mxu2 }
 0x266   : > { %719 = vrot.lane.b32.xlu1 %v712_v1, %s3329_s1 }
 0x2b8   : > { %v723_v7 = vpop.permute.xlu2 %722 }
 0x2b9   : > { %v738_v20 = vrot.slane %v723_v7, 4 }
 0x2d0   : > { %v717_v5 = vpop.permute.xlu1 %716 }
 0x2d1   : > { %v3565_v6 = vpack.i.bf16 %v717_v5, %v712_v1  ;;  %v740_v17 = vrot.slane %v717_v5, 4  ;;  %v739_v21 = vsel %vm726_vm0, %v738_v20, %v717_v5 }
 0x2d2   : > { %v745_v27 = vperm.slane %v739_v21, %v3575_v16 }
 0x2d3   : > { %3141 = vrot.lane.b32.xlu2 %v3565_v6, %s4274_s17  ;;  %v741_v22 = vsel %vm726_vm0, %v723_v7, %v740_v17 }
 0x2d4   : > { %v749_v28 = vperm.slane %v741_v22, %v3575_v16  ;;  %v750_v33 = vrot.slane %v745_v27, 4 }
 0x2d6   : > { %v762_v34 = vrot.slane %v749_v28, 4 }
 0x2d8   : > { %v720_v8 = vpop.permute.xlu1 %719 }
 0x2d9   : > { %v3569_v9 = vpack.i.bf16 %v723_v7, %v720_v8  ;;  %v725_v10 = vrot.slane %v720_v8, 4  ;;  %v729_v15 = vsel %vm726_vm0, %v720_v8, %v728_v13 }
 0x2da   : > { %v737_v19 = vperm.slane %v729_v15, %v3575_v16 }
 0x2db   : > { %3146 = vrot.lane.b32.xlu0 %v3569_v9, %s4274_s17  ;;  %v727_v14 = vsel %vm726_vm0, %v725_v10, %v712_v1 }
 0x2dc   : > { %v733_v18 = vperm.slane %v727_v14, %v3575_v16  ;;  %v764_v24 = vrot.slane %v737_v19, 4  ;;  %v763_v40 = vsel %vm726_vm0, %v762_v34, %v737_v19 }
 0x2dd   : > { %v769_v44 = vperm.slane %v763_v40, %v3585_v32 }
 0x2de   : > { %v752_v23 = vrot.slane %v733_v18, 4  ;;  %v765_v31 = vsel %vm726_vm0, %v749_v28, %v764_v24  ;;  %v751_v38 = vsel %vm726_vm0, %v750_v33, %v733_v18 }
 0x2df   : > { %v773_v36 = vperm.slane %v765_v31, %v3585_v32  ;;  %v757_v43 = vperm.slane %v751_v38, %v3585_v32  ;;  %v778_v54 = vrot.slane %v769_v44, 4 }
 0x2e0   : > { %v753_v29 = vsel %vm726_vm0, %v745_v27, %v752_v23 }
 0x2e1   : > { %v761_v35 = vperm.slane %v753_v29, %v3585_v32  ;;  %v780_v46 = vrot.slane %v773_v36, 4  ;;  %v774_v52 = vrot.slane %v757_v43, 4  ;;  %v779_v12 = vsel %vm726_vm0, 0.0, %v778_v54 }
 0x2e3   : > { %v776_v45 = vrot.slane %v761_v35, 4  ;;  %v781_v55 = vsel %vm726_vm0, 0.0, %v780_v46  ;;  %v793_v60 = vsel %vm726_vm0, %v780_v46, %v769_v44  ;;  %v775_v11 = vsel %vm726_vm0, 0.0, %v774_v52 }
 0x2e4   : > { %v798_v0 = vrot.slane %v781_v55, 4  ;;  %v797_v18 = vperm.slane %v793_v60, %v3575_v16 }
 0x2e5   : > { %v777_v53 = vsel %vm726_vm0, 0.0, %v776_v45  ;;  %v782_v24 = vsel %vm726_vm0, %v776_v45, %v757_v43 }
 0x2e6   : > { %v787_v63 = vrot.slane %v777_v53, 4  ;;  %v799_v19 = vsel %vm726_vm0, %v798_v0, %v779_v12  ;;  %v786_v36 = vperm.slane %v782_v24, %v3575_v16 }
 0x2e7   : > { %v803_v31 = vperm.slane %v799_v19, %v3575_v16 }
 0x2e8   : > { %v788_v25 = vsel %vm726_vm0, %v787_v63, %v775_v11  ;;  %v806_v55 = vrot.slane %v786_v36, 4 }
 0x2e9   : > { %v792_v40 = vperm.slane %v788_v25, %v3575_v16 }
 0x2eb   : > { %v804_v60 = vrot.slane %v792_v40, 4 }
 0x2ed   : > { %v805_v12 = vsel %vm726_vm0, %v804_v60, %v786_v36 }
 0x2ee   : > { %v811_v25 = vperm.slane %v805_v12, %v3585_v32 }
 0x32d   : > { %v3142_v37 = vpop.permute.xlu2 %3141 }
 0x32e   : > { %v3144_v41 = vunpack.i.h.bf16 %v3142_v37  ;;  %v3143_v42 = vunpack.i.l.bf16 %v3142_v37 }
 0x330   : > { %v862_v48 = vrot.slane %v3144_v41, 4  ;;  %v850_v49 = vrot.slane %v3143_v42, 4 }
 0x34d   : > { %v3147_v47 = vpop.permute.xlu0 %3146 }
 0x34e   : > { %v3149_v50 = vunpack.i.h.bf16 %v3147_v47  ;;  %v3148_v51 = vunpack.i.l.bf16 %v3147_v47 }
 0x350   : > { %v860_v56 = vrot.slane %v3149_v50, 4  ;;  %v863_v57 = vsel %vm726_vm0, %v3149_v50, %v862_v48  ;;  %v848_v58 = vrot.slane %v3148_v51, 4  ;;  %v851_v59 = vsel %vm726_vm0, %v3148_v51, %v850_v49 }
 0x351   : > { %v871_v61 = vperm.slane %v863_v57, %v3575_v16  ;;  %v859_v62 = vperm.slane %v851_v59, %v3575_v16  ;;  %v816_v49 = vrot.slane %v803_v31, 4 }
 0x352   : > { %v861_v1 = vsel %vm726_vm0, %v860_v56, %v3144_v41  ;;  %v849_v2 = vsel %vm726_vm0, %v848_v58, %v3143_v42  ;;  %v818_v41 = vrot.slane %v797_v18, 4 }
 0x353   : > { %v867_v5 = vperm.slane %v861_v1, %v3575_v16  ;;  %v884_v7 = vrot.slane %v871_v61, 4  ;;  %v855_v8 = vperm.slane %v849_v2, %v3575_v16  ;;  %v886_v10 = vrot.slane %v859_v62, 4 }
 0x354   : > { %v819_v56 = vsel %vm726_vm0, %v803_v31, %v818_v41 }
 0x355   : > { %v872_v13 = vrot.slane %v867_v5, 4  ;;  %v874_v14 = vrot.slane %v855_v8, 4  ;;  %v885_v15 = vsel %vm726_vm0, %v884_v7, %v859_v62  ;;  %v887_v17 = vsel %vm726_vm0, %v871_v61, %v886_v10 }
 0x356   : > { %v891_v20 = vperm.slane %v885_v15, %v3585_v32  ;;  %v895_v21 = vperm.slane %v887_v17, %v3585_v32  ;;  %v817_v62 = vsel %vm726_vm0, %v816_v49, %v797_v18  ;;  %v827_v2 = vperm.slane %v819_v56, %v3585_v32 }
 0x357   : > { %v873_v22 = vsel %vm726_vm0, %v872_v13, %v855_v8  ;;  %v875_v23 = vsel %vm726_vm0, %v867_v5, %v874_v14  ;;  %v807_v10 = vsel %vm726_vm0, %v792_v40, %v806_v55  ;;  %v823_v13 = vperm.slane %v817_v62, %v3585_v32 }
 0x358   : > { %v879_v26 = vperm.slane %v873_v22, %v3585_v32  ;;  %v883_v27 = vperm.slane %v875_v23, %v3585_v32  ;;  %v900_v28 = vrot.slane %v891_v20, 4  ;;  %v902_v29 = vrot.slane %v895_v21, 4 }
 0x359   : > { %v832_v21 = vrot.slane %v827_v2, 4  ;;  %v828_v31 = vrot.slane %v823_v13, 4 }
 0x35a   : > { %v896_v33 = vrot.slane %v879_v26, 4  ;;  %v898_v34 = vrot.slane %v883_v27, 4  ;;  %v903_v35 = vsel %vm726_vm0, 0.0, %v902_v29  ;;  %v915_v37 = vsel %vm726_vm0, %v902_v29, %v891_v20 }
 0x35b   : > { %v920_v38 = vrot.slane %v903_v35, 4  ;;  %v901_v43 = vsel %vm726_vm0, 0.0, %v900_v28  ;;  %v919_v45 = vperm.slane %v915_v37, %v3575_v16  ;;  %v815_v20 = vperm.slane %v807_v10, %v3585_v32 }
 0x35c   : > { %v899_v42 = vsel %vm726_vm0, 0.0, %v898_v34  ;;  %v904_v44 = vsel %vm726_vm0, %v898_v34, %v879_v26  ;;  %v897_v50 = vsel %vm726_vm0, 0.0, %v896_v33  ;;  %v830_v37 = vrot.slane %v811_v25, 4 }
 0x35d   : > { %v909_v46 = vrot.slane %v899_v42, 4  ;;  %v908_v47 = vperm.slane %v904_v44, %v3575_v16  ;;  %v921_v48 = vsel %vm726_vm0, %v920_v38, %v901_v43  ;;  %v940_v52 = vrot.slane %v919_v45, 4 }
 0x35e   : > { %v925_v51 = vperm.slane %v921_v48, %v3575_v16  ;;  %v833_v36 = vsel %vm726_vm0, %v832_v21, %v815_v20  ;;  %v829_v40 = vsel %vm726_vm0, %v828_v31, %v811_v25  ;;  %v831_v42 = vsel %vm726_vm0, %v823_v13, %v830_v37 }
 0x35f   : > { %v910_v53 = vsel %vm726_vm0, %v909_v46, %v897_v50  ;;  %v928_v54 = vrot.slane %v908_v47, 4  ;;  %v1082_v41 = vpack.c.bf16 %v833_v36, %v833_v36  ;;  %v1080_v43 = vpack.c.bf16 %v829_v40, %v829_v40 }
 0x360   : > { %v914_v57 = vperm.slane %v910_v53, %v3575_v16  ;;  %v941_v58 = vsel %vm726_vm0, %v925_v51, %v940_v52  ;;  %v938_v59 = vrot.slane %v925_v51, 4  ;;  %v1081_v44 = vpack.c.bf16 %v831_v42, %v831_v42 }
 0x361   : > { %v949_v61 = vperm.slane %v941_v58, %v3585_v32  ;;  %v3333_v48 = vmov -1e+30  }
 0x362   : > { %v929_v63 = vsel %vm726_vm0, %v914_v57, %v928_v54  ;;  %v926_v0 = vrot.slane %v914_v57, 4  ;;  %v939_v1 = vsel %vm726_vm0, %v938_v59, %v919_v45  ;;  %v834_v45 = vrot.slane %v815_v20, 4 }
 0x363   : > { %v937_v5 = vperm.slane %v929_v63, %v3585_v32  ;;  %v954_v7 = vrot.slane %v949_v61, 4  ;;  %v945_v8 = vperm.slane %v939_v1, %v3585_v32  ;;  %v3668_v49 = vsel %vm636_vm2, 0.0, %v3333_v48 }
 0x364   : > { %v927_v11 = vsel %vm726_vm0, %v926_v0, %v908_v47  ;;  %v835_v46 = vsel %vm726_vm0, %v827_v2, %v834_v45  ;;  %vm1220_vm2 = vcmask 1043456  }
 0x365   : > { %v955_v14 = vsel %vm726_vm0, %v954_v7, %v937_v5  ;;  %v956_v15 = vrot.slane %v937_v5, 4  ;;  %v933_v17 = vperm.slane %v927_v11, %v3585_v32  ;;  %v950_v18 = vrot.slane %v945_v8, 4 }
 0x366   : > { %v1086_v19 = vpack.c.bf16 %v955_v14, %v955_v14  ;;  %v1083_v47 = vpack.c.bf16 %v835_v46, %v835_v46 }
 0x367   : > { %v951_v22 = vsel %vm726_vm0, %v950_v18, %v933_v17  ;;  %v957_v23 = vsel %vm726_vm0, %v949_v61, %v956_v15  ;;  %v952_v24 = vrot.slane %v933_v17, 4 }
 0x368   : > { %v1131_v26 = vsel %vm1088_vm1, %v1086_v19, 0  ;;  %v1084_v27 = vpack.c.bf16 %v951_v22, %v951_v22  ;;  %v1087_v28 = vpack.c.bf16 %v957_v23, %v957_v23 }
 0x369   : > { %1140 = vmatpush.bf16.xpose.msrb.mxu1 %v1131_v26  ;;  %v953_v29 = vsel %vm726_vm0, %v945_v8, %v952_v24 }
 0x36a   : > { %v1093_v33 = vsel %vm1088_vm1, %v1084_v27, 0  ;;  %v1150_v34 = vsel %vm1088_vm1, %v1087_v28, 0  ;;  %v1085_v35 = vpack.c.bf16 %v953_v29, %v953_v29 }
 0x36b   : > { %1102 = vmatpush.bf16.xpose.msrb.mxu2 %v1093_v33 }
 0x36c   : > { %v1112_v38 = vsel %vm1088_vm1, %v1085_v35, 0 }
 0x36d   : > { %1121 = vmatpush.bf16.xpose.msra.mxu3 %v1112_v38 }
 0x370   : > { %2847 = vmatmul.msk.bf16.vlgmr.msrb.gmra.mxu1 %vm1088_vm1, %v1082_v41 }
 0x372   : > { %2845 = vmatmul.msk.bf16.vlgmr.msrb.gmra.mxu2 %vm1088_vm1, %v1080_v43 }
 0x373   : > { %1159 = vmatpush.bf16.xpose.msra.mxu2 %v1150_v34 }
 0x374   : > { %2846 = vmatmul.msk.bf16.vlgmr.msra.gmra.mxu3 %vm1088_vm1, %v1081_v44 }
 0x382   : > { %2848 = vmatmul.msk.bf16.vlgmr.msra.gmra.mxu2 %vm1088_vm1, %v1083_v47 }
 0x3ed   : > { %v1142_v50 = vpop.f32.mrf.mxu1 }
 0x3ee   : > { %v1143_v51 = vadd.f32 %v1142_v50, %v3668_v49 }
 0x3f0   : > { %v1171_v52 = vsel %vm1088_vm1, %v1143_v51, -inf }
 0x3f1   : > { %1172 = vmax.xlane.f32.xlu2 %v1171_v52 }
 0x3f5   : > { %v1104_v53 = vpop.f32.mrf.mxu2  ;;  %v1144_v54 = vpop.f32.mrf.mxu1 }
 0x3f6   : > { %v1105_v55 = vadd.f32 %v1104_v53, %v3668_v49 }
 0x3f7   : > { %v1123_v56 = vpop.f32.mrf.mxu3 }
 0x3f8   : > { %v1124_v57 = vadd.f32 %v1123_v56, %v3668_v49  ;;  %v1165_v58 = vsel %vm1088_vm1, %v1105_v55, -inf }
 0x3f9   : > { %1166 = vmax.xlane.f32.xlu1 %v1165_v58 }
 0x3fa   : > { %v1168_v3 = vsel %vm1088_vm1, %v1124_v57, -inf }
 0x3fb   : > { %1169 = vmax.xlane.f32.xlu2 %v1168_v3 }
 0x3fd   : > { %v1106_v4 = vpop.f32.mrf.mxu2 }
 0x3ff   : > { %v1125_v59 = vpop.f32.mrf.mxu3 }
 0x405   : > { %v1161_v60 = vpop.f32.mrf.mxu2 }
 0x406   : > { %v1162_v61 = vadd.f32 %v1161_v60, %v3668_v49 }
 0x408   : > { %v1174_v62 = vsel %vm1088_vm1, %v1162_v61, -inf }
 0x409   : > { %1175 = vmax.xlane.f32.xlu0 %v1174_v62 }
 0x40d   : > { %v1163_v63 = vpop.f32.mrf.mxu2 }
 0x412   : > { %3151 = vrot.lane.b32.xlu1 %v3565_v6, %s4276_s30 }
 0x413   : > { %3156 = vrot.lane.b32.xlu2 %v3569_v9, %s4276_s30 }
 0x464   : > { %v1173_v0 = vpop.xlane.xlu2 %1172 }
 0x465   : > { %v1179_v1 = vsub.f32 %v1143_v51, %v1173_v0 }
 0x467   : > { %v1185_v2 = vmul.f32 1.442695, %v1179_v1 }
 0x469   : > { %3202 = vpow2.f32 %v1185_v2 }
 0x46c   : > { %v1167_v5 = vpop.xlane.xlu1 %1166 }
 0x46d   : > { %v1177_v7 = vsub.f32 %v1105_v55, %v1167_v5 }
 0x46e   : > { %v1170_v8 = vpop.xlane.xlu2 %1169 }
 0x46f   : > { %v3682_v10 = vpop.eup %3202  ;;  %v1181_v11 = vmul.f32 1.442695, %v1177_v7  ;;  %v1178_v12 = vsub.f32 %v1124_v57, %v1170_v8 }
 0x470   : > { %v1195_v13 = vsel %vm1088_vm1, %v3682_v10, 0.0 }
 0x471   : > { %3204 = vpow2.f32 %v1181_v11  ;;  %v1183_v14 = vmul.f32 1.442695, %v1178_v12  ;;  %1196 = vadd.xlane.f32.xlu1 %v1195_v13 }
 0x473   : > { %3206 = vpow2.f32 %v1183_v14 }
 0x476   : > { %v3157_v20 = vpop.permute.xlu2 %3156 }
 0x477   : > { %v3686_v6 = vpop.eup %3204  ;;  %v3159_v22 = vunpack.i.h.bf16 %v3157_v20  ;;  %v3158_v23 = vunpack.i.l.bf16 %v3157_v20 }
 0x478   : > { %v1189_v9 = vsel %vm1088_vm1, %v3686_v6, 0.0 }
 0x479   : > { %v3690_v15 = vpop.eup %3206  ;;  %1190 = vadd.xlane.f32.xlu0 %v1189_v9  ;;  %v982_v25 = vrot.slane %v3159_v22, 4  ;;  %v970_v26 = vrot.slane %v3158_v23, 4 }
 0x47a   : > { %v1192_v17 = vsel %vm1088_vm1, %v3690_v15, 0.0 }
 0x47b   : > { %1193 = vadd.xlane.f32.xlu2 %v1192_v17 }
 0x47c   : > { %v1176_v18 = vpop.xlane.xlu0 %1175 }
 0x47d   : > { %v1180_v19 = vsub.f32 %v1162_v61, %v1176_v18 }
 0x47f   : > { %v1187_v21 = vmul.f32 1.442695, %v1180_v19 }
 0x481   : > { %3208 = vpow2.f32 %v1187_v21 }
 0x484   : > { %v3152_v24 = vpop.permute.xlu1 %3151 }
 0x485   : > { %v3154_v27 = vunpack.i.h.bf16 %v3152_v24  ;;  %v3153_v28 = vunpack.i.l.bf16 %v3152_v24 }
 0x487   : > { %v3694_v29 = vpop.eup %3208  ;;  %v983_v31 = vsel %vm726_vm0, %v982_v25, %v3154_v27  ;;  %v984_v33 = vrot.slane %v3154_v27, 4  ;;  %v971_v34 = vsel %vm726_vm0, %v970_v26, %v3153_v28  ;;  %v972_v35 = vrot.slane %v3153_v28, 4 }
 0x488   : > { %v989_v36 = vperm.slane %v983_v31, %v3575_v16  ;;  %v977_v37 = vperm.slane %v971_v34, %v3575_v16  ;;  %v1198_v38 = vsel %vm1088_vm1, %v3694_v29, 0.0 }
 0x489   : > { %v985_v40 = vsel %vm726_vm0, %v3159_v22, %v984_v33  ;;  %v973_v41 = vsel %vm726_vm0, %v3158_v23, %v972_v35  ;;  %1199 = vadd.xlane.f32.xlu0 %v1198_v38 }
 0x48a   : > { %v993_v42 = vperm.slane %v985_v40, %v3575_v16  ;;  %v994_v43 = vrot.slane %v989_v36, 4  ;;  %v981_v44 = vperm.slane %v973_v41, %v3575_v16  ;;  %v996_v45 = vrot.slane %v977_v37, 4 }
 0x48c   : > { %v1006_v46 = vrot.slane %v993_v42, 4  ;;  %v995_v47 = vsel %vm726_vm0, %v994_v43, %v977_v37  ;;  %v997_v48 = vsel %vm726_vm0, %v989_v36, %v996_v45  ;;  %v1008_v50 = vrot.slane %v981_v44, 4 }
 0x48d   : > { %v1001_v51 = vperm.slane %v995_v47, %v3585_v32  ;;  %v1005_v52 = vperm.slane %v997_v48, %v3585_v32 }
 0x48e   : > { %v1007_v53 = vsel %vm726_vm0, %v1006_v46, %v981_v44  ;;  %v1009_v54 = vsel %vm726_vm0, %v993_v42, %v1008_v50 }
 0x48f   : > { %v1013_v55 = vperm.slane %v1007_v53, %v3585_v32  ;;  %v1017_v56 = vperm.slane %v1009_v54, %v3585_v32  ;;  %v1018_v57 = vrot.slane %v1001_v51, 4  ;;  %v1020_v58 = vrot.slane %v1005_v52, 4 }
 0x491   : > { %v1021_v3 = vsel %vm726_vm0, 0.0, %v1020_v58  ;;  %v1022_v4 = vrot.slane %v1013_v55, 4  ;;  %v1024_v59 = vrot.slane %v1017_v56, 4  ;;  %v1026_v60 = vsel %vm726_vm0, %v1020_v58, %v1001_v51 }
 0x492   : > { %v1031_v61 = vrot.slane %v1021_v3, 4  ;;  %v1019_v62 = vsel %vm726_vm0, 0.0, %v1018_v57  ;;  %v1030_v0 = vperm.slane %v1026_v60, %v3575_v16 }
 0x493   : > { %v1025_v63 = vsel %vm726_vm0, 0.0, %v1024_v59  ;;  %v1037_v1 = vsel %vm726_vm0, %v1024_v59, %v1013_v55  ;;  %v1023_v8 = vsel %vm726_vm0, 0.0, %v1022_v4 }
 0x494   : > { %v1032_v2 = vsel %vm726_vm0, %v1031_v61, %v1019_v62  ;;  %v1042_v5 = vrot.slane %v1025_v63, 4  ;;  %v1041_v7 = vperm.slane %v1037_v1, %v3575_v16  ;;  %v1050_v12 = vrot.slane %v1030_v0, 4 }
 0x495   : > { %v1036_v11 = vperm.slane %v1032_v2, %v3575_v16 }
 0x496   : > { %v1043_v13 = vsel %vm726_vm0, %v1042_v5, %v1023_v8  ;;  %v1062_v14 = vrot.slane %v1041_v7, 4 }
 0x497   : > { %v1047_v9 = vperm.slane %v1043_v13, %v3575_v16  ;;  %v1048_v17 = vrot.slane %v1036_v11, 4  ;;  %v1051_v18 = vsel %vm726_vm0, %v1036_v11, %v1050_v12 }
 0x498   : > { %v1059_v19 = vperm.slane %v1051_v18, %v3585_v32 }
 0x499   : > { %v1049_v20 = vsel %vm726_vm0, %v1048_v17, %v1030_v0  ;;  %v1060_v21 = vrot.slane %v1047_v9, 4  ;;  %v1063_v22 = vsel %vm726_vm0, %v1047_v9, %v1062_v14 }
 0x49a   : > { %v1055_v23 = vperm.slane %v1049_v20, %v3585_v32  ;;  %v1071_v24 = vperm.slane %v1063_v22, %v3585_v32  ;;  %v1078_v25 = vrot.slane %v1059_v19, 4 }
 0x49b   : > { %v1061_v26 = vsel %vm726_vm0, %v1060_v21, %v1041_v7 }
 0x49c   : > { %v1067_v27 = vperm.slane %v1061_v26, %v3585_v32  ;;  %v1074_v28 = vrot.slane %v1055_v23, 4  ;;  %v1076_v31 = vrot.slane %v1071_v24, 4  ;;  %v1079_v33 = vsel %vm726_vm0, %v1071_v24, %v1078_v25 }
 0x49d   : > { %v1216_v41 = vpack.c.bf16 %v1079_v33, %v1079_v33 }
 0x49e   : > { %v1075_v34 = vsel %vm726_vm0, %v1067_v27, %v1074_v28  ;;  %v1077_v35 = vsel %vm726_vm0, %v1076_v31, %v1059_v19  ;;  %v1072_v36 = vrot.slane %v1067_v27, 4 }
 0x49f   : > { %v1214_v37 = vpack.c.bf16 %v1075_v34, %v1075_v34  ;;  %v1215_v38 = vpack.c.bf16 %v1077_v35, %v1077_v35  ;;  %v1279_v46 = vsel %vm1220_vm2, %v1216_v41, 0 }
 0x4a0   : > { %v1073_v40 = vsel %vm726_vm0, %v1072_v36, %v1055_v23 }
 0x4a1   : > { %v1241_v42 = vsel %vm1220_vm2, %v1214_v37, 0  ;;  %v1260_v43 = vsel %vm1220_vm2, %v1215_v38, 0  ;;  %v1213_v44 = vpack.c.bf16 %v1073_v40, %v1073_v40 }
 0x4a2   : > { %1250 = vmatpush.bf16.msra.mxu1 %v1241_v42  ;;  %1269 = vmatpush.bf16.msrb.mxu2 %v1260_v43 }
 0x4a3   : > { %v1222_v45 = vsel %vm1220_vm2, %v1213_v44, 0 }
 0x4a4   : > { %1231 = vmatpush.bf16.msrb.mxu3 %v1222_v45 }
 0x4a8   : > { %1288 = vmatpush.bf16.msra.mxu3 %v1279_v46 }
 0x4e4   : > { %v1197_v47 = vpop.xlane.xlu1 %1196 }
 0x4e5   : > { %3210 = vrcp.f32 %v1197_v47 }
 0x4eb   : > { %v3211_v48 = vpop.eup %3210 }
 0x4ec   : > { %v1207_v50 = vmul.f32 %v3211_v48, %v3682_v10  ;;  %v1191_v51 = vpop.xlane.xlu0 %1190 }
 0x4ed   : > { %3212 = vrcp.f32 %v1191_v51 }
 0x4ee   : > { %v1211_v52 = vpack.c.bf16 %v1207_v50, %v1207_v50  ;;  %v1194_v53 = vpop.xlane.xlu2 %1193 }
 0x4ef   : > { %3214 = vrcp.f32 %v1194_v53 }
 0x4f0   : > { %2851 = vmatmul.msk.bf16.vlgmr.msrb.gmra.mxu2 %vm1088_vm1, %v1211_v52 }
 0x4f3   : > { %v3213_v54 = vpop.eup %3212 }
 0x4f4   : > { %v1205_v55 = vmul.f32 %v3213_v54, %v3686_v6 }
 0x4f5   : > { %v3215_v56 = vpop.eup %3214 }
 0x4f6   : > { %v1206_v57 = vmul.f32 %v3215_v56, %v3690_v15  ;;  %v1209_v58 = vpack.c.bf16 %v1205_v55, %v1205_v55 }
 0x4f8   : > { %v1210_v3 = vpack.c.bf16 %v1206_v57, %v1206_v57  ;;  %2849 = vmatmul.msk.bf16.vlgmr.msrb.gmra.mxu3 %vm1088_vm1, %v1209_v58 }
 0x4fa   : > { %2850 = vmatmul.msk.bf16.vlgmr.msra.gmra.mxu1 %vm1088_vm1, %v1210_v3 }
 0x4fc   : > { %v1200_v10 = vpop.xlane.xlu0 %1199 }
 0x4fd   : > { %3216 = vrcp.f32 %v1200_v10 }
 0x503   : > { %v3217_v4 = vpop.eup %3216 }
 0x504   : > { %v1208_v59 = vmul.f32 %v3217_v4, %v3694_v29 }
 0x506   : > { %v1212_v60 = vpack.c.bf16 %v1208_v59, %v1208_v59 }
 0x508   : > { %2852 = vmatmul.msk.bf16.vlgmr.msra.gmra.mxu3 %vm1088_vm1, %v1212_v60 }
 0x573   : > { %v1271_v61 = vpop.f32.mrf.mxu2 }
 0x574   : > { %v1294_v2 = vrot.slane %v1271_v61, 4 }
 0x577   : > { %v1252_v62 = vpop.f32.mrf.mxu1 }
 0x578   : > { %v1308_v11 = vrot.slane %v1252_v62, 4 }
 0x57b   : > { %v1233_v6 = vpop.f32.mrf.mxu3  ;;  %v1273_v63 = vpop.f32.mrf.mxu2 }
 0x57c   : > { %v1296_v15 = vrot.slane %v1233_v6, 4  ;;  %v1295_v7 = vsel %vm726_vm0, %v1294_v2, %v1233_v6 }
 0x57d   : > { %v1301_v29 = vperm.slane %v1295_v7, %v3575_v16 }
 0x57e   : > { %v1297_v5 = vsel %vm726_vm0, %v1271_v61, %v1296_v15 }
 0x57f   : > { %v1254_v0 = vpop.f32.mrf.mxu1  ;;  %v1305_v8 = vperm.slane %v1297_v5, %v3575_v16  ;;  %v1320_v19 = vrot.slane %v1301_v29, 4 }
 0x581   : > { %v1332_v9 = vrot.slane %v1305_v8, 4 }
 0x583   : > { %v1235_v1 = vpop.f32.mrf.mxu3 }
 0x58b   : > { %v1290_v12 = vpop.f32.mrf.mxu3 }
 0x58c   : > { %v1306_v13 = vrot.slane %v1290_v12, 4  ;;  %v1309_v14 = vsel %vm726_vm0, %v1290_v12, %v1308_v11  ;;  %v3054_v11 = vld [vmem:[%s4249_s7 + $0x8] sm:$0xff] }
 0x58d   : > { %v1317_v17 = vperm.slane %v1309_v14, %v3575_v16  ;;  %1451 = vmatpush.bf16.msra.mxu0 %v3054_v11  ;;  %v3187_v11 = vld [vmem:[%s4256_s14] ss:$0 sm:$0xff] }
 0x58e   : > { %v1307_v18 = vsel %vm726_vm0, %v1306_v13, %v1252_v62 }
 0x58f   : > { %v1313_v20 = vperm.slane %v1307_v18, %v3575_v16  ;;  %v1330_v21 = vrot.slane %v1317_v17, 4  ;;  %v1333_v22 = vsel %vm726_vm0, %v1317_v17, %v1332_v9 }
 0x590   : > { %v1341_v23 = vperm.slane %v1333_v22, %v3585_v32 }
 0x591   : > { %v1318_v24 = vrot.slane %v1313_v20, 4  ;;  %v1321_v25 = vsel %vm726_vm0, %v1313_v20, %v1320_v19  ;;  %v1331_v26 = vsel %vm726_vm0, %v1330_v21, %v1305_v8  ;;  %v3183_v20 = vld [vmem:[%s4250_s8] ss:$0 sm:$0xff] }
 0x592   : > { %v1329_v27 = vperm.slane %v1321_v25, %v3585_v32  ;;  %v1337_v28 = vperm.slane %v1331_v26, %v3585_v32  ;;  %v1348_v31 = vrot.slane %v1341_v23, 4 }
 0x593   : > { %v1319_v33 = vsel %vm726_vm0, %v1318_v24, %v1301_v29  ;;  %v1292_v34 = vpop.f32.mrf.mxu3  ;;  %v3053_v29 = vld [vmem:[%s4249_s7] sm:$0xff] }
 0x594   : > { %v1325_v35 = vperm.slane %v1319_v33, %v3585_v32  ;;  %v1344_v36 = vrot.slane %v1329_v27, 4  ;;  %v1346_v37 = vrot.slane %v1337_v28, 4  ;;  %v1349_v38 = vsel %vm726_vm0, 0.0, %v1348_v31  ;;  %1452 = vmatpush.bf16.msra.mxu0 %v3053_v29  ;;  %v3056_v34 = vld [vmem:[%s4253_s11 + $0x8] sm:$0xff] }
 0x595   : > { %v1361_v40 = vsel %vm726_vm0, %v1348_v31, %v1337_v28  ;;  %v1366_v41 = vrot.slane %v1349_v38, 4  ;;  %1521 = vmatpush.bf16.msrb.mxu1 %v3056_v34 }
 0x596   : > { %v1342_v42 = vrot.slane %v1325_v35, 4  ;;  %v1345_v43 = vsel %vm726_vm0, 0.0, %v1344_v36  ;;  %v1347_v44 = vsel %vm726_vm0, 0.0, %v1346_v37  ;;  %v1365_v45 = vperm.slane %v1361_v40, %v3575_v16 }
 0x597   : > { %v1355_v46 = vrot.slane %v1345_v43, 4  ;;  %v1350_v47 = vsel %vm726_vm0, %v1344_v36, %v1325_v35  ;;  %v1367_v48 = vsel %vm726_vm0, %v1366_v41, %v1347_v44  ;;  %v3064_v35 = vld [vmem:[%s4255_s13 + $0x38] sm:$0xff] }
 0x598   : > { %v1343_v50 = vsel %vm726_vm0, 0.0, %v1342_v42  ;;  %v1354_v51 = vperm.slane %v1350_v47, %v3575_v16  ;;  %v1371_v52 = vperm.slane %v1367_v48, %v3575_v16  ;;  %v1386_v53 = vrot.slane %v1365_v45, 4  ;;  %1602 = vmatpush.bf16.msra.mxu2 %v3064_v35  ;;  %v3188_v35 = vld [vmem:[%s4296_s3 + $0x1] ss:$0 sm:$0xff] }
 0x599   : > { %v1356_v54 = vsel %vm726_vm0, %v1355_v46, %v1343_v50  ;;  %v3184_v46 = vld [vmem:[%s4251_s9] ss:$0 sm:$0xff] }
 0x59a   : > { %v1360_v55 = vperm.slane %v1356_v54, %v3575_v16  ;;  %v1374_v56 = vrot.slane %v1354_v51, 4  ;;  %v1387_v57 = vsel %vm726_vm0, %v1371_v52, %v1386_v53  ;;  %v1384_v58 = vrot.slane %v1371_v52, 4  ;;  %v3185_v50 = vld [vmem:[%s4297_s23] ss:$0 sm:$0xff]  ;;  %v3063_v54 = vld [vmem:[%s4255_s13 + $0x30] sm:$0xff] }
 0x59b   : > { %v1395_v3 = vperm.slane %v1387_v57, %v3585_v32  ;;  %v3060_v57 = vld [vmem:[%s4255_s13 + $0x18] sm:$0xff] }
 0x59c   : > { %v1375_v10 = vsel %vm726_vm0, %v1360_v55, %v1374_v56  ;;  %v1372_v4 = vrot.slane %v1360_v55, 4  ;;  %v1385_v59 = vsel %vm726_vm0, %v1384_v58, %v1365_v45  ;;  %1603 = vmatpush.bf16.msra.mxu2 %v3063_v54  ;;  %v3062_v55 = vld [vmem:[%s4255_s13 + $0x28] sm:$0xff]  ;;  %v3061_v56 = vld [vmem:[%s4255_s13 + $0x20] sm:$0xff]  ;;  %v3059_v58 = vld [vmem:[%s4255_s13 + $0x10] sm:$0xff] }
 0x59d   : > { %v1383_v60 = vperm.slane %v1375_v10, %v3585_v32  ;;  %v1400_v61 = vrot.slane %v1395_v3, 4  ;;  %v1391_v62 = vperm.slane %v1385_v59, %v3585_v32  ;;  %v3057_v10 = vld [vmem:[%s4255_s13] sm:$0xff] }
 0x59e   : > { %v1373_v6 = vsel %vm726_vm0, %v1372_v4, %v1354_v51  ;;  %v3186_v4 = vld [vmem:[%s4254_s12] ss:$0 sm:$0xff] }
 0x59f   : > { %v1401_v63 = vsel %vm726_vm0, %v1400_v61, %v1383_v60  ;;  %v1379_v0 = vperm.slane %v1373_v6, %v3585_v32  ;;  %v1396_v15 = vrot.slane %v1391_v62, 4  ;;  %v1402_v7 = vrot.slane %v1383_v60, 4 }
 0x5a0   : > { %1409 = vrot.lane.b32.xlu0 %v1401_v63, %s4273_s19  ;;  %1604 = vmatpush.bf16.msra.mxu2 %v3062_v55  ;;  %s3040_s19 = sshll.u32 %s3452_s10, 3 }
 0x5a1   : > { %v1397_v1 = vsel %vm726_vm0, %v1396_v15, %v1379_v0  ;;  %v1398_v2 = vrot.slane %v1379_v0, 4  ;;  %v1403_v8 = vsel %vm726_vm0, %v1395_v3, %v1402_v7  ;;  %v3058_v3 = vld [vmem:[%s4255_s13 + $0x8] sm:$0xff] }
 0x5a3   : > { %v1399_v5 = vsel %vm726_vm0, %v1391_v62, %v1398_v2 }
 0x5a4   : > { %1605 = vmatpush.bf16.msra.mxu2 %v3061_v56 }
 0x5a8   : > { %1405 = vrot.lane.b32.xlu0 %v1399_v5, %s4272_s28  ;;  %1606 = vmatpush.bf16.msra.mxu2 %v3060_v57  ;;  %s506_s28 = sand.u32 1, %s3314_s29  }
 0x5a9   : > { %s2799_s22 = sshll.u32 %s506_s28, 3 }
 0x5ac   : > { %1607 = vmatpush.bf16.msra.mxu2 %v3059_v58 }
 0x5b0   : > { %1413 = vrot.lane.b32.xlu0 %v1403_v8, %s4271_s18  ;;  %1608 = vmatpush.bf16.msra.mxu2 %v3058_v3  ;;  %s2734_s18 = scalar_lea.sflag [#allocation5], %s506_s28 }
 0x5b4   : > { %1609 = vmatpush.bf16.msra.mxu2 %v3057_v10 }
 0x612   : > { %v1410_v12 = vpop.permute.xlu0 %1409 }
 0x61a   : > { %v1406_v13 = vpop.permute.xlu0 %1405 }
 0x61b   : > { %v1416_v14 = vsel %vm1088_vm1, %v1397_v1, %v1406_v13 }
 0x61c   : > { %v1418_v17 = vsel %vm1417_vm3, %v1416_v14, %v1410_v12 }
 0x622   : > { %v1414_v9 = vpop.permute.xlu0 %1413 }
 0x623   : > { %v1420_v18 = vsel %vm1419_vm4, %v1418_v17, %v1414_v9 }
 0x624   : > { %v1421_v19 = vpack.c.bf16 %v1420_v18, %v1420_v18 }
 0x626   : > { %2861 = vmatmul.msk.bf16.vlgmr.msra.gmra.mxu0 %vm640_vm11, %v1421_v19 }
 0x6a3   : > { %v1454_v21 = vpop.f32.mrf.mxu0 }
 0x6a4   : > { %v1455_v22 = vadd.f32 %v3183_v20, %v1454_v21 }
 0x6a6   : > { %v3807_v23 = vadd.f32 %v1455_v22, %v3536_v30  ;;  %v3055_v30 = vld [vmem:[%s4253_s11] sm:$0xff]  ;;  %v3066_v22 = vld [vmem:[%s4247_s5 + $0x18] sm:$0xff] }
 0x6a7   : > { %1522 = vmatpush.bf16.msrb.mxu1 %v3055_v30  ;;  %1687 = vmatpush.bf16.msrb.mxu3 %v3066_v22 }
 0x6a8   : > { %v1461_v24 = vsel %vm640_vm11, %v3807_v23, 0.0 }
 0x6a9   : > { %1462 = vadd.xlane.f32.xlu1 %v1461_v24 }
 0x6ab   : > { %v1456_v25 = vpop.f32.mrf.mxu0 }
 0x71c   : > { %v1463_v26 = vpop.xlane.xlu1 %1462 }
 0x71d   : > { %v1464_v27 = vmul.f32 %v1463_v26, %v3540_v39 }
 0x71f   : > { %v1465_v28 = vsub.f32 %v3807_v23, %v1464_v27 }
 0x721   : > { %v1466_v31 = vmul.f32 %v1465_v28, %v1465_v28 }
 0x723   : > { %v1467_v33 = vsel %vm640_vm11, %v1466_v31, 0.0 }
 0x724   : > { %1468 = vadd.xlane.f32.xlu0 %v1467_v33 }
 0x797   : > { %v1469_v36 = vpop.xlane.xlu0 %1468 }
 0x798   : > { %v1470_v37 = vmul.f32 %v1469_v36, %v3540_v39 }
 0x79a   : > { %v1471_v38 = vadd.f32 1e-05, %v1470_v37 }
 0x79c   : > { %3218 = vrsqrt.f32 %v1471_v38  ;;  %vm1478_vm6 = vweird.f32 %v1471_v38 }
 0x7a2   : > { %v3219_v40 = vpop.eup %3218 }
 0x7a3   : > { %v1473_v41 = vmul.f32 %v3219_v40, %v1471_v38  ;;  %vm1479_vm5 = vweird.f32 %v3219_v40  ;;  %v3189_v38 = vld [vmem:[%s4246_s4 + $0x1] ss:$0 sm:$0xff] }
 0x7a4   : > { %vm1480_vm7 = vmor %vm1478_vm6, %vm1479_vm5 }
 0x7a5   : > { %v1474_v42 = vmul.f32 %v3219_v40, %v1473_v41 }
 0x7a7   : > { %v1475_v43 = vmul.f32 0.5, %v1474_v42 }
 0x7a9   : > { %v1476_v44 = vsub.f32 1.5, %v1475_v43  ;;  %v3190_v43 = vld [vmem:[%s4248_s6 + $0x1] ss:$0 sm:$0xff] }
 0x7ab   : > { %v1477_v45 = vmul.f32 %v3219_v40, %v1476_v44 }
 0x7ad   : > { %v1481_v47 = vsel %vm1480_vm7, %v3219_v40, %v1477_v45 }
 0x7ae   : > { %v1482_v48 = vmul.f32 %v1481_v47, %v1465_v28 }
 0x7b0   : > { %v1486_v51 = vmul.f32 %v3184_v46, %v1482_v48 }
 0x7b2   : > { %v1490_v52 = vadd.f32 %v3185_v50, %v1486_v51 }
 0x7b4   : > { %v1491_v53 = vpack.c.bf16 %v1490_v52, %v1490_v52 }
 0x7b6   : > { %2870 = vmatmul.msk.bf16.vlgmr.msrb.gmra.mxu1 %vm640_vm11, %v1491_v53 }
 0x833   : > { %v1524_v59 = vpop.f32.mrf.mxu1 }
 0x834   : > { %v1525_v60 = vadd.f32 %v3186_v4, %v1524_v59 }
 0x836   : > { %v1528_v61 = vmul.f32 %v1525_v60, %v1525_v60 }
 0x838   : > { %v1529_v62 = vmul.f32 %v1528_v61, %v1525_v60 }
 0x83a   : > { %v1530_v6 = vmul.f32 0.044715, %v1529_v62 }
 0x83b   : > { %v1526_v63 = vpop.f32.mrf.mxu1 }
 0x83c   : > { %v1531_v0 = vadd.f32 %v1530_v6, %v1525_v60 }
 0x83e   : > { %v1532_v15 = vmul.f32 0.7978846, %v1531_v0 }
 0x840   : > { %3220 = vtanh.f32 %v1532_v15 }
 0x846   : > { %v3221_v1 = vpop.eup %3220 }
 0x847   : > { %v1534_v2 = vadd.f32 1.0, %v3221_v1 }
 0x849   : > { %v1535_v5 = vmul.f32 0.5, %v1534_v2 }
 0x84b   : > { %v1536_v7 = vmul.f32 %v1535_v5, %v1525_v60 }
 0x84d   : > { %v1537_v8 = vpack.c.bf16 %v1536_v7, %v1536_v7 }
 0x84f   : > { %1610 = vmatmul.bf16.vlgmr.msra.gmra.mxu2 %v1537_v8 }
 0x8d2   : > { %v1611_v29 = vpop.f32.mrf.mxu2 }
 0x8d3   : > { %v1615_v12 = vadd.f32 %v1611_v29, %v3807_v23  ;;  %v3065_v23 = vld [vmem:[%s4247_s5 + $0x10] sm:$0xff] }
 0x8d4   : > { %1688 = vmatpush.bf16.msrb.mxu3 %v3065_v23 }
 0x8d5   : > { %v3859_v13 = vadd.f32 %v3187_v11, %v1615_v12 }
 0x8d7   : > { %v1625_v14 = vsel %vm640_vm11, %v3859_v13, 0.0 }
 0x8d8   : > { %1626 = vadd.xlane.f32.xlu2 %v1625_v14 }
 0x8da   : > { %v1613_v9 = vpop.f32.mrf.mxu2 }
 0x94b   : > { %v1627_v17 = vpop.xlane.xlu2 %1626 }
 0x94c   : > { %v1628_v18 = vmul.f32 %v1627_v17, %v3540_v39 }
 0x94e   : > { %v1629_v19 = vsub.f32 %v3859_v13, %v1628_v18 }
 0x950   : > { %v1630_v20 = vmul.f32 %v1629_v19, %v1629_v19 }
 0x952   : > { %v1631_v21 = vsel %vm640_vm11, %v1630_v20, 0.0 }
 0x953   : > { %1632 = vadd.xlane.f32.xlu1 %v1631_v21 }
 0x9c6   : > { %v1633_v24 = vpop.xlane.xlu1 %1632 }
 0x9c7   : > { %v1634_v25 = vmul.f32 %v1633_v24, %v3540_v39 }
 0x9c9   : > { %v1635_v26 = vadd.f32 1e-05, %v1634_v25 }
 0x9cb   : > { %3222 = vrsqrt.f32 %v1635_v26  ;;  %vm1642_vm9 = vweird.f32 %v1635_v26 }
 0x9d1   : > { %v3223_v27 = vpop.eup %3222 }
 0x9d2   : > { %v1637_v28 = vmul.f32 %v3223_v27, %v1635_v26  ;;  %vm1643_vm8 = vweird.f32 %v3223_v27 }
 0x9d3   : > { %vm1644_vm10 = vmor %vm1642_vm9, %vm1643_vm8 }
 0x9d4   : > { %v1638_v31 = vmul.f32 %v3223_v27, %v1637_v28 }
 0x9d6   : > { %v1639_v33 = vmul.f32 0.5, %v1638_v31 }
 0x9d8   : > { %v1640_v34 = vsub.f32 1.5, %v1639_v33 }
 0x9da   : > { %v1641_v30 = vmul.f32 %v3223_v27, %v1640_v34 }
 0x9dc   : > { %v1645_v36 = vsel %vm1644_vm10, %v3223_v27, %v1641_v30 }
 0x9dd   : > { %v1646_v37 = vmul.f32 %v1645_v36, %v1629_v19 }
 0x9df   : > { %v1650_v40 = vmul.f32 %v3188_v35, %v1646_v37 }
 0x9e1   : > { %v1654_v41 = vadd.f32 %v3189_v38, %v1650_v40 }
 0x9e3   : > { %v1655_v42 = vpack.c.bf16 %v1654_v41, %v1654_v41 }
 0x9e5   : > { %2918 = vmatmul.msk.bf16.vlgmr.msrb.gmra.mxu3 %vm640_vm11, %v1655_v42 }
 0xa68   : > { %v1690_v44 = vpop.f32.mrf.mxu3 }
 0xa69   : > { %v1691_v45 = vadd.f32 %v3190_v43, %v1690_v44 }
 0xa6b   : > { %1698 = vrot.lane.b32.xlu1 %v1691_v45, %s3329_s1  ;;  %1695 = vrot.lane.b32.xlu2 %v1691_v45, %s3328_s20  ;;  %v1706_v54 = vrot.slane %v1691_v45, 4  ;;  %s4301_s20 = smov 8   ;;  %s4302_s1 = smov 24  }
 0xa70   : > { %v1692_v46 = vpop.f32.mrf.mxu3 }
 0xa73   : > { %1701 = vrot.lane.b32.xlu2 %v1691_v45, %s3327_s21  ;;  %s4300_s21 = smov 16  }
 0xac5   : > { %v1696_v47 = vpop.permute.xlu2 %1695 }
 0xac6   : > { %v3170_v48 = vpack.i.bf16 %v1696_v47, %v1691_v45  ;;  %v1718_v58 = vrot.slane %v1696_v47, 4 }
 0xac8   : > { %3171 = vrot.lane.b32.xlu0 %v3170_v48, %s4298_s27  ;;  %3161 = vrot.lane.b32.xlu1 %v3170_v48, %s4299_s0 }
 0xacd   : > { %v1702_v50 = vpop.permute.xlu2 %1701 }
 0xace   : > { %v1716_v57 = vrot.slane %v1702_v50, 4  ;;  %v1719_v4 = vsel %vm726_vm0, %v1702_v50, %v1718_v58 }
 0xacf   : > { %v1727_v62 = vperm.slane %v1719_v4, %v3575_v16 }
 0xad0   : > { %v1717_v59 = vsel %vm726_vm0, %v1716_v57, %v1696_v47 }
 0xad1   : > { %v1723_v6 = vperm.slane %v1717_v59, %v3575_v16  ;;  %v1740_v15 = vrot.slane %v1727_v62, 4 }
 0xad3   : > { %v1728_v7 = vrot.slane %v1723_v6, 4 }
 0xadd   : > { %v1699_v51 = vpop.permute.xlu1 %1698 }
 0xade   : > { %v3888_v52 = vpack.i.bf16 %v1702_v50, %v1699_v51  ;;  %v1704_v53 = vrot.slane %v1699_v51, 4  ;;  %v1707_v56 = vsel %vm726_vm0, %v1699_v51, %v1706_v54 }
 0xadf   : > { %v1715_v10 = vperm.slane %v1707_v56, %v3575_v16 }
 0xae0   : > { %3166 = vrot.lane.b32.xlu2 %v3888_v52, %s4299_s0  ;;  %v1705_v55 = vsel %vm726_vm0, %v1704_v53, %v1691_v45 }
 0xae1   : > { %v1711_v3 = vperm.slane %v1705_v55, %v3575_v16  ;;  %v1742_v61 = vrot.slane %v1715_v10, 4  ;;  %v1741_v2 = vsel %vm726_vm0, %v1740_v15, %v1715_v10 }
 0xae2   : > { %v1747_v11 = vperm.slane %v1741_v2, %v3585_v32 }
 0xae3   : > { %v1730_v60 = vrot.slane %v1711_v3, 4  ;;  %v1743_v0 = vsel %vm726_vm0, %v1727_v62, %v1742_v61  ;;  %v1729_v8 = vsel %vm726_vm0, %v1728_v7, %v1711_v3 }
 0xae4   : > { %v1751_v5 = vperm.slane %v1743_v0, %v3585_v32  ;;  %v1735_v23 = vperm.slane %v1729_v8, %v3585_v32  ;;  %v1756_v24 = vrot.slane %v1747_v11, 4 }
 0xae5   : > { %v1731_v63 = vsel %vm726_vm0, %v1723_v6, %v1730_v60 }
 0xae6   : > { %v1739_v1 = vperm.slane %v1731_v63, %v3585_v32  ;;  %v1758_v14 = vrot.slane %v1751_v5, 4  ;;  %v1752_v41 = vrot.slane %v1735_v23, 4  ;;  %v1757_v48 = vsel %vm726_vm0, 0.0, %v1756_v24 }
 0xae8   : > { %v1754_v12 = vrot.slane %v1739_v1, 4  ;;  %v1759_v28 = vsel %vm726_vm0, 0.0, %v1758_v14  ;;  %v1771_v37 = vsel %vm726_vm0, %v1758_v14, %v1747_v11  ;;  %v1753_v58 = vsel %vm726_vm0, 0.0, %v1752_v41 }
 0xae9   : > { %v1776_v42 = vrot.slane %v1759_v28, 4  ;;  %v1775_v50 = vperm.slane %v1771_v37, %v3575_v16 }
 0xaea   : > { %v1755_v27 = vsel %vm726_vm0, 0.0, %v1754_v12  ;;  %v1760_v62 = vsel %vm726_vm0, %v1754_v12, %v1735_v23 }
 0xaeb   : > { %v1765_v45 = vrot.slane %v1755_v27, 4  ;;  %v1777_v3 = vsel %vm726_vm0, %v1776_v42, %v1757_v48  ;;  %v1796_v15 = vrot.slane %v1775_v50, 4 }
 0xaec   : > { %v1781_v0 = vperm.slane %v1777_v3, %v3575_v16 }
 0xaed   : > { %v1766_v59 = vsel %vm726_vm0, %v1765_v45, %v1753_v58 }
 0xaee   : > { %v1770_v11 = vperm.slane %v1766_v59, %v3575_v16  ;;  %v1794_v23 = vrot.slane %v1781_v0, 4 }
 0xaf0   : > { %v1782_v27 = vrot.slane %v1770_v11, 4 }
 0xb3a   : > { %v3162_v29 = vpop.permute.xlu1 %3161  ;;  %v3167_v18 = vpop.permute.xlu2 %3166 }
 0xb3b   : > { %v3164_v9 = vunpack.i.h.bf16 %v3162_v29  ;;  %v3163_v17 = vunpack.i.l.bf16 %v3162_v29  ;;  %v3169_v19 = vunpack.i.h.bf16 %v3167_v18  ;;  %v3168_v20 = vunpack.i.l.bf16 %v3167_v18 }
 0xb3c   : > { %v1764_v29 = vperm.slane %v1760_v62, %v3575_v16 }
 0xb3d   : > { %v1840_v21 = vrot.slane %v3164_v9, 4  ;;  %v1828_v22 = vrot.slane %v3163_v17, 4  ;;  %v1838_v25 = vrot.slane %v3169_v19, 4  ;;  %v1826_v26 = vrot.slane %v3168_v20, 4 }
 0xb3f   : > { %v1841_v31 = vsel %vm726_vm0, %v3169_v19, %v1840_v21  ;;  %v1829_v33 = vsel %vm726_vm0, %v3168_v20, %v1828_v22  ;;  %v1839_v34 = vsel %vm726_vm0, %v1838_v25, %v3164_v9  ;;  %v1827_v35 = vsel %vm726_vm0, %v1826_v26, %v3163_v17 }
 0xb40   : > { %v1849_v30 = vperm.slane %v1841_v31, %v3575_v16  ;;  %v1837_v36 = vperm.slane %v1829_v33, %v3575_v16  ;;  %v1845_v38 = vperm.slane %v1839_v34, %v3575_v16  ;;  %v1833_v40 = vperm.slane %v1827_v35, %v3575_v16 }
 0xb41   : > { %v1797_v26 = vsel %vm726_vm0, %v1781_v0, %v1796_v15  ;;  %v1784_v33 = vrot.slane %v1764_v29, 4 }
 0xb42   : > { %v1862_v43 = vrot.slane %v1849_v30, 4  ;;  %v1864_v44 = vrot.slane %v1837_v36, 4  ;;  %v1850_v46 = vrot.slane %v1845_v38, 4  ;;  %v1852_v47 = vrot.slane %v1833_v40, 4 }
 0xb44   : > { %v1863_v51 = vsel %vm726_vm0, %v1862_v43, %v1837_v36  ;;  %v1865_v53 = vsel %vm726_vm0, %v1849_v30, %v1864_v44  ;;  %v1851_v54 = vsel %vm726_vm0, %v1850_v46, %v1833_v40  ;;  %v1853_v55 = vsel %vm726_vm0, %v1845_v38, %v1852_v47 }
 0xb45   : > { %v1869_v56 = vperm.slane %v1863_v51, %v3585_v32  ;;  %v1873_v57 = vperm.slane %v1865_v53, %v3585_v32  ;;  %v1857_v10 = vperm.slane %v1851_v54, %v3585_v32  ;;  %v1861_v4 = vperm.slane %v1853_v55, %v3585_v32 }
 0xb46   : > { %v1805_v38 = vperm.slane %v1797_v26, %v3585_v32  ;;  %v1795_v40 = vsel %vm726_vm0, %v1794_v23, %v1775_v50  ;;  %v1783_v44 = vsel %vm726_vm0, %v1782_v27, %v1764_v29  ;;  %v1785_v47 = vsel %vm726_vm0, %v1770_v11, %v1784_v33 }
 0xb47   : > { %v1878_v60 = vrot.slane %v1869_v56, 4  ;;  %v1880_v61 = vrot.slane %v1873_v57, 4  ;;  %v1874_v6 = vrot.slane %v1857_v10, 4  ;;  %v1876_v63 = vrot.slane %v1861_v4, 4 }
 0xb48   : > { %v1801_v53 = vperm.slane %v1795_v40, %v3585_v32  ;;  %v1793_v3 = vperm.slane %v1785_v47, %v3585_v32 }
 0xb49   : > { %v1881_v1 = vsel %vm726_vm0, 0.0, %v1880_v61  ;;  %v1893_v2 = vsel %vm726_vm0, %v1880_v61, %v1869_v56  ;;  %v1877_v5 = vsel %vm726_vm0, 0.0, %v1876_v63  ;;  %v1879_v12 = vsel %vm726_vm0, 0.0, %v1878_v60 }
 0xb4a   : > { %v1897_v7 = vperm.slane %v1893_v2, %v3575_v16  ;;  %v1898_v8 = vrot.slane %v1881_v1, 4  ;;  %v1887_v14 = vrot.slane %v1877_v5, 4  ;;  %v1882_v9 = vsel %vm726_vm0, %v1876_v63, %v1857_v10 }
 0xb4b   : > { %v1875_v17 = vsel %vm726_vm0, 0.0, %v1874_v6  ;;  %v1886_v18 = vperm.slane %v1882_v9, %v3575_v16  ;;  %v1789_v56 = vperm.slane %v1783_v44, %v3585_v32  ;;  %v1810_v10 = vrot.slane %v1805_v38, 4 }
 0xb4c   : > { %v1899_v19 = vsel %vm726_vm0, %v1898_v8, %v1879_v12  ;;  %v1918_v20 = vrot.slane %v1897_v7, 4  ;;  %v1888_v21 = vsel %vm726_vm0, %v1887_v14, %v1875_v17  ;;  %v1806_v62 = vrot.slane %v1801_v53, 4 }
 0xb4d   : > { %v1903_v22 = vperm.slane %v1899_v19, %v3575_v16  ;;  %v1892_v24 = vperm.slane %v1888_v21, %v3575_v16  ;;  %v1906_v25 = vrot.slane %v1886_v18, 4  ;;  %v1808_v63 = vrot.slane %v1789_v56, 4 }
 0xb4e   : > { %v1811_v1 = vsel %vm726_vm0, %v1810_v10, %v1793_v3  ;;  %v1807_v2 = vsel %vm726_vm0, %v1806_v62, %v1789_v56  ;;  %v1812_v29 = vrot.slane %v1793_v3, 4 }
 0xb4f   : > { %v1919_v28 = vsel %vm726_vm0, %v1903_v22, %v1918_v20  ;;  %v1916_v31 = vrot.slane %v1903_v22, 4  ;;  %v1907_v34 = vsel %vm726_vm0, %v1892_v24, %v1906_v25  ;;  %v1904_v35 = vrot.slane %v1892_v24, 4 }
 0xb50   : > { %v1927_v30 = vperm.slane %v1919_v28, %v3585_v32  ;;  %v1915_v36 = vperm.slane %v1907_v34, %v3585_v32  ;;  %v2060_v5 = vpack.c.bf16 %v1811_v1, %v1811_v1  ;;  %v2058_v8 = vpack.c.bf16 %v1807_v2, %v1807_v2 }
 0xb51   : > { %v1917_v37 = vsel %vm726_vm0, %v1916_v31, %v1897_v7  ;;  %v1905_v42 = vsel %vm726_vm0, %v1904_v35, %v1886_v18  ;;  %v1809_v7 = vsel %vm726_vm0, %v1801_v53, %v1808_v63  ;;  %v1813_v12 = vsel %vm726_vm0, %v1805_v38, %v1812_v29 }
 0xb52   : > { %v1932_v41 = vrot.slane %v1927_v30, 4  ;;  %v1923_v43 = vperm.slane %v1917_v37, %v3585_v32  ;;  %v1911_v45 = vperm.slane %v1905_v42, %v3585_v32  ;;  %v1934_v46 = vrot.slane %v1915_v36, 4 }
 0xb53   : > { %v2059_v11 = vpack.c.bf16 %v1809_v7, %v1809_v7  ;;  %v2061_v14 = vpack.c.bf16 %v1813_v12, %v1813_v12 }
 0xb54   : > { %v1933_v48 = vsel %vm726_vm0, %v1932_v41, %v1915_v36  ;;  %v1928_v51 = vrot.slane %v1923_v43, 4  ;;  %v1930_v55 = vrot.slane %v1911_v45, 4  ;;  %v1935_v50 = vsel %vm726_vm0, %v1927_v30, %v1934_v46  ;;  %v3172_v30 = vpop.permute.xlu0 %3171 }
 0xb55   : > { %v2064_v54 = vpack.c.bf16 %v1933_v48, %v1933_v48  ;;  %v2065_v58 = vpack.c.bf16 %v1935_v50, %v1935_v50  ;;  %v3174_v56 = vunpack.i.h.bf16 %v3172_v30 }
 0xb56   : > { %v1929_v57 = vsel %vm726_vm0, %v1928_v51, %v1911_v45  ;;  %v1931_v60 = vsel %vm726_vm0, %v1923_v43, %v1930_v55 }
 0xb57   : > { %v2108_v4 = vsel %vm1088_vm1, %v2064_v54, 0  ;;  %v2062_v59 = vpack.c.bf16 %v1929_v57, %v1929_v57  ;;  %v2063_v61 = vpack.c.bf16 %v1931_v60, %v1931_v60  ;;  %v2127_v15 = vsel %vm1088_vm1, %v2065_v58, 0 }
 0xb58   : > { %2117 = vmatpush.bf16.xpose.msra.mxu3 %v2108_v4  ;;  %v3173_v57 = vunpack.i.l.bf16 %v3172_v30  ;;  %v1962_v3 = vrot.slane %v3174_v56, 4 }
 0xb59   : > { %v2070_v6 = vsel %vm1088_vm1, %v2062_v59, 0  ;;  %v2089_v0 = vsel %vm1088_vm1, %v2063_v61, 0 }
 0xb5a   : > { %2079 = vmatpush.bf16.xpose.msrb.mxu0 %v2070_v6  ;;  %2098 = vmatpush.bf16.xpose.msra.mxu1 %v2089_v0  ;;  %v1950_v10 = vrot.slane %v3173_v57, 4 }
 0xb5f   : > { %2921 = vmatmul.msk.bf16.vlgmr.msra.gmra.mxu3 %vm1088_vm1, %v2060_v5 }
 0xb61   : > { %2919 = vmatmul.msk.bf16.vlgmr.msrb.gmra.mxu0 %vm1088_vm1, %v2058_v8  ;;  %2920 = vmatmul.msk.bf16.vlgmr.msra.gmra.mxu1 %vm1088_vm1, %v2059_v11 }
 0xb62   : > { %2136 = vmatpush.bf16.xpose.msra.mxu0 %v2127_v15 }
 0xb71   : > { %2922 = vmatmul.msk.bf16.vlgmr.msra.gmra.mxu0 %vm1088_vm1, %v2061_v14 }
 0xbde   : > { %v2081_v9 = vpop.f32.mrf.mxu0  ;;  %v2100_v18 = vpop.f32.mrf.mxu1 }
 0xbdf   : > { %v2082_v17 = vadd.f32 %v2081_v9, %v3668_v49  ;;  %v2101_v19 = vadd.f32 %v2100_v18, %v3668_v49 }
 0xbe1   : > { %v2142_v20 = vsel %vm1088_vm1, %v2082_v17, -inf  ;;  %v2145_v22 = vsel %vm1088_vm1, %v2101_v19, -inf }
 0xbe2   : > { %v2119_v21 = vpop.f32.mrf.mxu3  ;;  %2143 = vmax.xlane.f32.xlu2 %v2142_v20  ;;  %2146 = vmax.xlane.f32.xlu1 %v2145_v22 }
 0xbe3   : > { %v2120_v23 = vadd.f32 %v2119_v21, %v3668_v49 }
 0xbe5   : > { %v2148_v24 = vsel %vm1088_vm1, %v2120_v23, -inf }
 0xbe6   : > { %2149 = vmax.xlane.f32.xlu0 %v2148_v24  ;;  %v2083_v25 = vpop.f32.mrf.mxu0  ;;  %v2102_v26 = vpop.f32.mrf.mxu1 }
 0xbea   : > { %v2121_v27 = vpop.f32.mrf.mxu3 }
 0xbee   : > { %v2138_v28 = vpop.f32.mrf.mxu0 }
 0xbef   : > { %v2139_v31 = vadd.f32 %v2138_v28, %v3668_v49 }
 0xbf1   : > { %v2151_v33 = vsel %vm1088_vm1, %v2139_v31, -inf }
 0xbf2   : > { %2152 = vmax.xlane.f32.xlu0 %v2151_v33 }
 0xbf6   : > { %v2140_v34 = vpop.f32.mrf.mxu0 }
 0xc06   : > { %3176 = vrot.lane.b32.xlu0 %v3888_v52, %s4298_s27  ;;  %s4304_s27 = sld [smem:[#allocation20_spill]] }
 0xc0c   : > { %s2744_s0 = scalar_lea.hbm %s4304_s27, %s3040_s19  ;;  %s3278_s17 = scalar_lea.hbm %s4304_s27, 16 }
 0xc55   : > { %v2144_v35 = vpop.xlane.xlu2 %2143  ;;  %v2147_v36 = vpop.xlane.xlu1 %2146 }
 0xc56   : > { %v2154_v37 = vsub.f32 %v2082_v17, %v2144_v35  ;;  %v2155_v38 = vsub.f32 %v2101_v19, %v2147_v36 }
 0xc58   : > { %v2158_v40 = vmul.f32 1.442695, %v2154_v37  ;;  %v2160_v41 = vmul.f32 1.442695, %v2155_v38 }
 0xc59   : > { %v2150_v42 = vpop.xlane.xlu0 %2149 }
 0xc5a   : > { %3224 = vpow2.f32 %v2158_v40  ;;  %v2156_v43 = vsub.f32 %v2120_v23, %v2150_v42 }
 0xc5b   : > { %3226 = vpow2.f32 %v2160_v41 }
 0xc5c   : > { %v2162_v44 = vmul.f32 1.442695, %v2156_v43 }
 0xc5e   : > { %3228 = vpow2.f32 %v2162_v44 }
 0xc60   : > { %v3990_v49 = vpop.eup %3224 }
 0xc61   : > { %v3992_v45 = vpop.eup %3226  ;;  %v2166_v52 = vsel %vm1088_vm1, %v3990_v49, 0.0 }
 0xc62   : > { %v2169_v46 = vsel %vm1088_vm1, %v3992_v45, 0.0  ;;  %2167 = vadd.xlane.f32.xlu2 %v2166_v52 }
 0xc63   : > { %2170 = vadd.xlane.f32.xlu1 %v2169_v46 }
 0xc64   : > { %v3998_v47 = vpop.eup %3228 }
 0xc65   : > { %v2153_v48 = vpop.xlane.xlu0 %2152  ;;  %v2172_v51 = vsel %vm1088_vm1, %v3998_v47, 0.0 }
 0xc66   : > { %v2157_v53 = vsub.f32 %v2139_v31, %v2153_v48  ;;  %2173 = vadd.xlane.f32.xlu0 %v2172_v51 }
 0xc68   : > { %v2164_v54 = vmul.f32 1.442695, %v2157_v53 }
 0xc6a   : > { %3230 = vpow2.f32 %v2164_v54 }
 0xc70   : > { %v4002_v55 = vpop.eup %3230 }
 0xc71   : > { %v2175_v50 = vsel %vm1088_vm1, %v4002_v55, 0.0 }
 0xc72   : > { %2176 = vadd.xlane.f32.xlu1 %v2175_v50 }
 0xc78   : > { %v3177_v58 = vpop.permute.xlu0 %3176 }
 0xc79   : > { %v3179_v4 = vunpack.i.h.bf16 %v3177_v58  ;;  %v3178_v59 = vunpack.i.l.bf16 %v3177_v58 }
 0xc7b   : > { %v1960_v60 = vrot.slane %v3179_v4, 4  ;;  %v1963_v61 = vsel %vm726_vm0, %v3179_v4, %v1962_v3  ;;  %v1948_v62 = vrot.slane %v3178_v59, 4  ;;  %v1951_v6 = vsel %vm726_vm0, %v3178_v59, %v1950_v10 }
 0xc7c   : > { %v1971_v63 = vperm.slane %v1963_v61, %v3575_v16  ;;  %v1959_v0 = vperm.slane %v1951_v6, %v3575_v16 }
 0xc7d   : > { %v1961_v15 = vsel %vm726_vm0, %v1960_v60, %v3174_v56  ;;  %v1949_v1 = vsel %vm726_vm0, %v1948_v62, %v3173_v57 }
 0xc7e   : > { %v1967_v2 = vperm.slane %v1961_v15, %v3575_v16  ;;  %v1984_v5 = vrot.slane %v1971_v63, 4  ;;  %v1955_v7 = vperm.slane %v1949_v1, %v3575_v16  ;;  %v1986_v8 = vrot.slane %v1959_v0, 4 }
 0xc80   : > { %v1972_v11 = vrot.slane %v1967_v2, 4  ;;  %v1974_v29 = vrot.slane %v1955_v7, 4  ;;  %v1985_v12 = vsel %vm726_vm0, %v1984_v5, %v1959_v0  ;;  %v1987_v14 = vsel %vm726_vm0, %v1971_v63, %v1986_v8 }
 0xc81   : > { %v1991_v9 = vperm.slane %v1985_v12, %v3585_v32  ;;  %v1995_v17 = vperm.slane %v1987_v14, %v3585_v32 }
 0xc82   : > { %v1973_v18 = vsel %vm726_vm0, %v1972_v11, %v1955_v7  ;;  %v1975_v19 = vsel %vm726_vm0, %v1967_v2, %v1974_v29 }
 0xc83   : > { %v1979_v20 = vperm.slane %v1973_v18, %v3585_v32  ;;  %v1983_v21 = vperm.slane %v1975_v19, %v3585_v32  ;;  %v2000_v22 = vrot.slane %v1991_v9, 4  ;;  %v2002_v23 = vrot.slane %v1995_v17, 4 }
 0xc85   : > { %v1996_v24 = vrot.slane %v1979_v20, 4  ;;  %v1998_v25 = vrot.slane %v1983_v21, 4  ;;  %v2003_v26 = vsel %vm726_vm0, 0.0, %v2002_v23  ;;  %v2015_v27 = vsel %vm726_vm0, %v2002_v23, %v1991_v9 }
 0xc86   : > { %v2020_v28 = vrot.slane %v2003_v26, 4  ;;  %v2001_v33 = vsel %vm726_vm0, 0.0, %v2000_v22  ;;  %v2019_v34 = vperm.slane %v2015_v27, %v3575_v16 }
 0xc87   : > { %v1999_v31 = vsel %vm726_vm0, 0.0, %v1998_v25  ;;  %v2004_v30 = vsel %vm726_vm0, %v1998_v25, %v1979_v20  ;;  %v1997_v38 = vsel %vm726_vm0, 0.0, %v1996_v24 }
 0xc88   : > { %v2009_v35 = vrot.slane %v1999_v31, 4  ;;  %v2008_v36 = vperm.slane %v2004_v30, %v3575_v16  ;;  %v2021_v37 = vsel %vm726_vm0, %v2020_v28, %v2001_v33  ;;  %v2040_v41 = vrot.slane %v2019_v34, 4 }
 0xc89   : > { %v2025_v40 = vperm.slane %v2021_v37, %v3575_v16 }
 0xc8a   : > { %v2010_v42 = vsel %vm726_vm0, %v2009_v35, %v1997_v38  ;;  %v2028_v43 = vrot.slane %v2008_v36, 4 }
 0xc8b   : > { %v2014_v44 = vperm.slane %v2010_v42, %v3575_v16  ;;  %v2041_v52 = vsel %vm726_vm0, %v2025_v40, %v2040_v41  ;;  %v2038_v46 = vrot.slane %v2025_v40, 4 }
 0xc8c   : > { %v2049_v48 = vperm.slane %v2041_v52, %v3585_v32 }
 0xc8d   : > { %v2029_v51 = vsel %vm726_vm0, %v2014_v44, %v2028_v43  ;;  %v2026_v53 = vrot.slane %v2014_v44, 4  ;;  %v2039_v54 = vsel %vm726_vm0, %v2038_v46, %v2019_v34 }
 0xc8e   : > { %v2037_v50 = vperm.slane %v2029_v51, %v3585_v32  ;;  %v2054_v56 = vrot.slane %v2049_v48, 4  ;;  %v2045_v57 = vperm.slane %v2039_v54, %v3585_v32 }
 0xc8f   : > { %v2027_v58 = vsel %vm726_vm0, %v2026_v53, %v2008_v36 }
 0xc90   : > { %v2055_v3 = vsel %vm726_vm0, %v2054_v56, %v2037_v50  ;;  %v2033_v10 = vperm.slane %v2027_v58, %v3585_v32  ;;  %v2050_v4 = vrot.slane %v2045_v57, 4  ;;  %v2056_v59 = vrot.slane %v2037_v50, 4 }
 0xc91   : > { %v2192_v60 = vpack.c.bf16 %v2055_v3, %v2055_v3 }
 0xc92   : > { %v2051_v61 = vsel %vm726_vm0, %v2050_v4, %v2033_v10  ;;  %v2057_v62 = vsel %vm726_vm0, %v2049_v48, %v2056_v59  ;;  %v2052_v6 = vrot.slane %v2033_v10, 4 }
 0xc93   : > { %v2236_v63 = vsel %vm1220_vm2, %v2192_v60, 0  ;;  %v2190_v0 = vpack.c.bf16 %v2051_v61, %v2051_v61  ;;  %v2193_v15 = vpack.c.bf16 %v2057_v62, %v2057_v62 }
 0xc94   : > { %2245 = vmatpush.bf16.msrb.mxu3 %v2236_v63  ;;  %v2053_v1 = vsel %vm726_vm0, %v2045_v57, %v2052_v6 }
 0xc95   : > { %v2198_v2 = vsel %vm1220_vm2, %v2190_v0, 0  ;;  %v2255_v5 = vsel %vm1220_vm2, %v2193_v15, 0  ;;  %v2191_v7 = vpack.c.bf16 %v2053_v1, %v2053_v1 }
 0xc96   : > { %2207 = vmatpush.bf16.msrb.mxu1 %v2198_v2  ;;  %2264 = vmatpush.bf16.msrb.mxu0 %v2255_v5 }
 0xc97   : > { %v2217_v8 = vsel %vm1220_vm2, %v2191_v7, 0 }
 0xc98   : > { %2226 = vmatpush.bf16.msrb.mxu2 %v2217_v8 }
 0xcd5   : > { %v2168_v11 = vpop.xlane.xlu2 %2167 }
 0xcd6   : > { %v2171_v29 = vpop.xlane.xlu1 %2170  ;;  %3232 = vrcp.f32 %v2168_v11 }
 0xcd7   : > { %3234 = vrcp.f32 %v2171_v29 }
 0xcd9   : > { %v2174_v12 = vpop.xlane.xlu0 %2173 }
 0xcda   : > { %3236 = vrcp.f32 %v2174_v12 }
 0xcdc   : > { %v3233_v14 = vpop.eup %3232 }
 0xcdd   : > { %v3235_v9 = vpop.eup %3234  ;;  %v2182_v17 = vmul.f32 %v3233_v14, %v3990_v49 }
 0xcde   : > { %v2183_v18 = vmul.f32 %v3235_v9, %v3992_v45 }
 0xcdf   : > { %v2186_v19 = vpack.c.bf16 %v2182_v17, %v2182_v17 }
 0xce0   : > { %v3237_v20 = vpop.eup %3236  ;;  %v2187_v21 = vpack.c.bf16 %v2183_v18, %v2183_v18 }
 0xce1   : > { %v2184_v22 = vmul.f32 %v3237_v20, %v3998_v47  ;;  %2923 = vmatmul.msk.bf16.vlgmr.msrb.gmra.mxu1 %vm1088_vm1, %v2186_v19 }
 0xce2   : > { %2924 = vmatmul.msk.bf16.vlgmr.msrb.gmra.mxu2 %vm1088_vm1, %v2187_v21 }
 0xce3   : > { %v2188_v23 = vpack.c.bf16 %v2184_v22, %v2184_v22 }
 0xce5   : > { %v2177_v24 = vpop.xlane.xlu1 %2176  ;;  %2925 = vmatmul.msk.bf16.vlgmr.msrb.gmra.mxu3 %vm1088_vm1, %v2188_v23 }
 0xce6   : > { %3238 = vrcp.f32 %v2177_v24 }
 0xcec   : > { %v3239_v25 = vpop.eup %3238 }
 0xced   : > { %v2185_v26 = vmul.f32 %v3239_v25, %v4002_v55 }
 0xcef   : > { %v2189_v49 = vpack.c.bf16 %v2185_v26, %v2185_v26 }
 0xcf1   : > { %2926 = vmatmul.msk.bf16.vlgmr.msrb.gmra.mxu0 %vm1088_vm1, %v2189_v49 }
 0xd5e   : > { %v2209_v45 = vpop.f32.mrf.mxu1 }
 0xd5f   : > { %v2272_v31 = vrot.slane %v2209_v45, 4 }
 0xd65   : > { %v2228_v27 = vpop.f32.mrf.mxu2 }
 0xd66   : > { %v2211_v28 = vpop.f32.mrf.mxu1  ;;  %v2284_v36 = vrot.slane %v2228_v27, 4 }
 0xd68   : > { %v2247_v47 = vpop.f32.mrf.mxu3 }
 0xd69   : > { %v2270_v33 = vrot.slane %v2247_v47, 4  ;;  %v2273_v34 = vsel %vm726_vm0, %v2247_v47, %v2272_v31 }
 0xd6a   : > { %v2281_v35 = vperm.slane %v2273_v34, %v3575_v16 }
 0xd6b   : > { %v2271_v30 = vsel %vm726_vm0, %v2270_v33, %v2209_v45 }
 0xd6c   : > { %v2277_v38 = vperm.slane %v2271_v30, %v3575_v16  ;;  %v2308_v42 = vrot.slane %v2281_v35, 4 }
 0xd6d   : > { %v2230_v37 = vpop.f32.mrf.mxu2 }
 0xd6e   : > { %v2266_v55 = vpop.f32.mrf.mxu0  ;;  %v2296_v46 = vrot.slane %v2277_v38, 4 }
 0xd6f   : > { %v2282_v40 = vrot.slane %v2266_v55, 4  ;;  %v2285_v41 = vsel %vm726_vm0, %v2266_v55, %v2284_v36  ;;  %v3068_v36 = vld [vmem:[%s4249_s7 + $0x18] sm:$0xff] }
 0xd70   : > { %v2293_v43 = vperm.slane %v2285_v41, %v3575_v16  ;;  %v2249_v44 = vpop.f32.mrf.mxu3  ;;  %2427 = vmatpush.bf16.msra.mxu1 %v3068_v36 }
 0xd71   : > { %v2283_v52 = vsel %vm726_vm0, %v2282_v40, %v2228_v27  ;;  %v3191_v44 = vld [vmem:[%s4250_s8 + $0x1] ss:$0 sm:$0xff] }
 0xd72   : > { %v2289_v48 = vperm.slane %v2283_v52, %v3575_v16  ;;  %v2306_v51 = vrot.slane %v2293_v43, 4  ;;  %v2309_v53 = vsel %vm726_vm0, %v2293_v43, %v2308_v42 }
 0xd73   : > { %v2317_v54 = vperm.slane %v2309_v53, %v3585_v32 }
 0xd74   : > { %v2294_v50 = vrot.slane %v2289_v48, 4  ;;  %v2297_v56 = vsel %vm726_vm0, %v2289_v48, %v2296_v46  ;;  %v2307_v57 = vsel %vm726_vm0, %v2306_v51, %v2281_v35 }
 0xd75   : > { %v2305_v58 = vperm.slane %v2297_v56, %v3585_v32  ;;  %v2313_v3 = vperm.slane %v2307_v57, %v3585_v32  ;;  %v2324_v10 = vrot.slane %v2317_v54, 4 }
 0xd76   : > { %v2295_v4 = vsel %vm726_vm0, %v2294_v50, %v2277_v38  ;;  %v2268_v59 = vpop.f32.mrf.mxu0 }
 0xd77   : > { %v2301_v60 = vperm.slane %v2295_v4, %v3585_v32  ;;  %v2320_v61 = vrot.slane %v2305_v58, 4  ;;  %v2322_v62 = vrot.slane %v2313_v3, 4  ;;  %v2325_v6 = vsel %vm726_vm0, 0.0, %v2324_v10 }
 0xd78   : > { %v2337_v63 = vsel %vm726_vm0, %v2324_v10, %v2313_v3  ;;  %v2342_v0 = vrot.slane %v2325_v6, 4  ;;  %v3070_v3 = vld [vmem:[%s4253_s11 + $0x18] sm:$0xff] }
 0xd79   : > { %v2318_v15 = vrot.slane %v2301_v60, 4  ;;  %v2321_v1 = vsel %vm726_vm0, 0.0, %v2320_v61  ;;  %v2323_v2 = vsel %vm726_vm0, 0.0, %v2322_v62  ;;  %v2341_v5 = vperm.slane %v2337_v63, %v3575_v16  ;;  %2501 = vmatpush.bf16.msra.mxu2 %v3070_v3  ;;  %v3078_v10 = vld [vmem:[%s4255_s13 + $0x78] sm:$0xff]  ;;  %v3080_v3 = vld [vmem:[%s4294_s26 + $0x8] sm:$0xff] }
 0xd7a   : > { %v2331_v7 = vrot.slane %v2321_v1, 4  ;;  %v2326_v8 = vsel %vm726_vm0, %v2320_v61, %v2301_v60  ;;  %v2343_v11 = vsel %vm726_vm0, %v2342_v0, %v2323_v2  ;;  %2583 = vmatpush.bf16.msra.mxu3 %v3078_v10  ;;  %v3192_v1 = vld [vmem:[%s4251_s9 + $0x1] ss:$0 sm:$0xff] }
 0xd7b   : > { %v2319_v29 = vsel %vm726_vm0, 0.0, %v2318_v15  ;;  %v2330_v12 = vperm.slane %v2326_v8, %v3575_v16  ;;  %v2347_v14 = vperm.slane %v2343_v11, %v3575_v16  ;;  %v2362_v9 = vrot.slane %v2341_v5, 4  ;;  %v3079_v10 = vld [vmem:[%s4294_s26] sm:$0xff] }
 0xd7c   : > { %v2332_v17 = vsel %vm726_vm0, %v2331_v7, %v2319_v29  ;;  %v3193_v7 = vld [vmem:[%s4297_s23 + $0x1] ss:$0 sm:$0xff] }
 0xd7d   : > { %v2336_v18 = vperm.slane %v2332_v17, %v3575_v16  ;;  %v2350_v19 = vrot.slane %v2330_v12, 4  ;;  %v2363_v20 = vsel %vm726_vm0, %v2347_v14, %v2362_v9  ;;  %v2360_v21 = vrot.slane %v2347_v14, 4  ;;  %v3076_v14 = vld [vmem:[%s4255_s13 + $0x68] sm:$0xff]  ;;  %v3075_v9 = vld [vmem:[%s4255_s13 + $0x60] sm:$0xff]  ;;  %v3074_v17 = vld [vmem:[%s4255_s13 + $0x58] sm:$0xff] }
 0xd7e   : > { %v2371_v22 = vperm.slane %v2363_v20, %v3585_v32  ;;  %v3071_v20 = vld [vmem:[%s4255_s13 + $0x40] sm:$0xff] }
 0xd7f   : > { %v2351_v23 = vsel %vm726_vm0, %v2336_v18, %v2350_v19  ;;  %v2348_v24 = vrot.slane %v2336_v18, 4  ;;  %v2361_v25 = vsel %vm726_vm0, %v2360_v21, %v2341_v5  ;;  %v3073_v18 = vld [vmem:[%s4255_s13 + $0x50] sm:$0xff]  ;;  %v3072_v19 = vld [vmem:[%s4255_s13 + $0x48] sm:$0xff]  ;;  %v3194_v21 = vld [vmem:[%s4254_s12 + $0x1] ss:$0 sm:$0xff] }
 0xd80   : > { %v2359_v26 = vperm.slane %v2351_v23, %v3585_v32  ;;  %v2376_v49 = vrot.slane %v2371_v22, 4  ;;  %v2367_v45 = vperm.slane %v2361_v25, %v3585_v32 }
 0xd81   : > { %v2349_v27 = vsel %vm726_vm0, %v2348_v24, %v2330_v12  ;;  %v3077_v12 = vld [vmem:[%s4255_s13 + $0x70] sm:$0xff] }
 0xd82   : > { %v2377_v16 = vsel %vm726_vm0, %v2376_v49, %v2359_v26  ;;  %v2355_v28 = vperm.slane %v2349_v27, %v3585_v32  ;;  %v2372_v31 = vrot.slane %v2367_v45, 4  ;;  %v2378_v30 = vrot.slane %v2359_v26, 4  ;;  %v3067_v32 = vld [vmem:[%s4249_s7 + $0x10] sm:$0xff]  ;;  %2584 = vmatpush.bf16.msra.mxu3 %v3077_v12 }
 0xd83   : > { %2385 = vrot.lane.b32.xlu1 %v2377_v16, %s4300_s21  ;;  %2428 = vmatpush.bf16.msra.mxu1 %v3067_v32  ;;  %s508_s21 = scalar_lea.vmem [#allocation4], %s2799_s22 }
 0xd84   : > { %v2374_v47 = vrot.slane %v2355_v28, 4  ;;  %v2373_v33 = vsel %vm726_vm0, %v2372_v31, %v2355_v28  ;;  %v2379_v35 = vsel %vm726_vm0, %v2371_v22, %v2378_v30 }
 0xd86   : > { %v2375_v34 = vsel %vm726_vm0, %v2367_v45, %v2374_v47  ;;  %2585 = vmatpush.bf16.msra.mxu3 %v3076_v14 }
 0xd87   : > { %2381 = vrot.lane.b32.xlu2 %v2375_v34, %s4301_s20  ;;  %v3195_v34 = vld [vmem:[%s4256_s14 + $0x1] ss:$0 sm:$0xff]  ;;  %s2746_s20 = sshll.u32 %s508_s21, 4  ;;  %s2747_s20 = int_to_ptr.vmem [resolvable:$true] %s2746_s20 }
 0xd8a   : > { %2586 = vmatpush.bf16.msra.mxu3 %v3075_v9 }
 0xd8e   : > { %2587 = vmatpush.bf16.msra.mxu3 %v3074_v17 }
 0xd8f   : > { %2389 = vrot.lane.b32.xlu2 %v2379_v35, %s4302_s1  ;;  %s2748_s1 = sshll.u32 %s2744_s0, 4  ;;  %s2749_s1 = int_to_ptr.hbm [resolvable:$true] %s2748_s1 }
 0xd90   : > { %s3272_s24 = sshra.s32 %s2749_s1, 4  ;;  %s3273_s24 = int_to_ptr.hbm [resolvable:$true] %s3272_s24 }
 0xd91   : > { %s3274_s2 = scalar_lea.hbm %s3273_s24, 8  ;;  %p3279_p13 = scmp.lt.s32.totalorder %s3273_s24, %s4304_s27 }
 0xd92   : > { %2588 = vmatpush.bf16.msra.mxu3 %v3073_v18  ;;  %p3275_p10 = scmp.ne.s32.totalorder %s3273_s24, %s3274_s2  ;;  %p3280_p0 = scmp.lt.s32.totalorder %s3278_s17, %s3274_s2 }
 0xd94   : > { %p3276_p11 = pnand %p3275_p10, %p3469_p5  ;;  %p3281_p1 = por %p3280_p0, %p3279_p13 }
 0xd96   : > { %2589 = vmatpush.bf16.msra.mxu3 %v3072_v19  ;;  %p3277_p12 = pneg %p3276_p11 }
 0xd98   : > { %p3282_p2 = pnand %p3281_p1, %p3277_p12 }
 0xd9a   : > { %2590 = vmatpush.bf16.msra.mxu3 %v3071_v20 }
 0xde1   : > { %v2382_v37 = vpop.permute.xlu2 %2381 }
 0xde2   : > { %v2392_v38 = vsel %vm1088_vm1, %v2373_v33, %v2382_v37 }
 0xde9   : > { %v2390_v40 = vpop.permute.xlu2 %2389 }
 0xdf5   : > { %v2386_v55 = vpop.permute.xlu1 %2385 }
 0xdf6   : > { %v2393_v41 = vsel %vm1417_vm3, %v2392_v38, %v2386_v55  ;;  %v3086_v38 = vld [vmem:[%s4294_s26 + $0x38] sm:$0xff] }
 0xdf7   : > { %v2394_v42 = vsel %vm1419_vm4, %v2393_v41, %v2390_v40  ;;  %v2717_v55 = vsel %vm640_vm11, %v3086_v38, 0  ;;  %v3085_v40 = vld [vmem:[%s4294_s26 + $0x30] sm:$0xff] }
 0xdf8   : > { %v2395_v43 = vpack.c.bf16 %v2394_v42, %v2394_v42  ;;  %2719 = vmatpush.bf16.xpose.msra.mxu0 %v2717_v55  ;;  %v2714_v41 = vsel %vm640_vm11, %v3085_v40, 0  ;;  %v3084_v42 = vld [vmem:[%s4294_s26 + $0x28] sm:$0xff] }
 0xdfa   : > { %2940 = vmatmul.msk.bf16.vlgmr.msra.gmra.mxu1 %vm640_vm11, %v2395_v43  ;;  %v2711_v43 = vsel %vm640_vm11, %v3084_v42, 0 }
 0xe00   : > { %2720 = vmatpush.bf16.xpose.msra.mxu0 %v2714_v41 }
 0xe08   : > { %2721 = vmatpush.bf16.xpose.msra.mxu0 %v2711_v43 }
 0xe77   : > { %v2430_v52 = vpop.f32.mrf.mxu1 }
 0xe78   : > { %v2431_v46 = vadd.f32 %v3191_v44, %v2430_v52  ;;  %v3083_v44 = vld [vmem:[%s4294_s26 + $0x20] sm:$0xff] }
 0xe7a   : > { %v4115_v48 = vadd.f32 %v2431_v46, %v3859_v13  ;;  %v3069_v13 = vld [vmem:[%s4253_s11 + $0x10] sm:$0xff]  ;;  %v2708_v46 = vsel %vm640_vm11, %v3083_v44, 0 }
 0xe7b   : > { %2502 = vmatpush.bf16.msra.mxu2 %v3069_v13  ;;  %2722 = vmatpush.bf16.xpose.msra.mxu0 %v2708_v46  ;;  %v2699_v13 = vsel %vm640_vm11, %v3080_v3, 0 }
 0xe7c   : > { %v2439_v51 = vsel %vm640_vm11, %v4115_v48, 0.0 }
 0xe7d   : > { %2440 = vadd.xlane.f32.xlu1 %v2439_v51 }
 0xe7f   : > { %v2432_v53 = vpop.f32.mrf.mxu1 }
 0xe80   : > { %v3082_v53 = vld [vmem:[%s4294_s26 + $0x18] sm:$0xff] }
 0xef0   : > { %v2441_v54 = vpop.xlane.xlu1 %2440 }
 0xef1   : > { %v2442_v50 = vmul.f32 %v2441_v54, %v3540_v39 }
 0xef3   : > { %v2443_v56 = vsub.f32 %v4115_v48, %v2442_v50 }
 0xef5   : > { %v2444_v57 = vmul.f32 %v2443_v56, %v2443_v56 }
 0xef7   : > { %v2445_v58 = vsel %vm640_vm11, %v2444_v57, 0.0  ;;  %v3081_v57 = vld [vmem:[%s4294_s26 + $0x10] sm:$0xff] }
 0xef8   : > { %2446 = vadd.xlane.f32.xlu0 %v2445_v58  ;;  %v2702_v58 = vsel %vm640_vm11, %v3081_v57, 0 }
 0xf6b   : > { %v2447_v4 = vpop.xlane.xlu0 %2446 }
 0xf6c   : > { %v2448_v59 = vmul.f32 %v2447_v4, %v3540_v39  ;;  %v2696_v4 = vsel %vm640_vm11, %v3079_v10, 0 }
 0xf6e   : > { %v2449_v60 = vadd.f32 1e-05, %v2448_v59 }
 0xf70   : > { %3240 = vrsqrt.f32 %v2449_v60  ;;  %vm2456_vm13 = vweird.f32 %v2449_v60 }
 0xf76   : > { %v3241_v61 = vpop.eup %3240 }
 0xf77   : > { %v2451_v62 = vmul.f32 %v3241_v61, %v2449_v60  ;;  %vm2457_vm12 = vweird.f32 %v3241_v61 }
 0xf78   : > { %vm2458_vm14 = vmor %vm2456_vm13, %vm2457_vm12 }
 0xf79   : > { %v2452_v6 = vmul.f32 %v3241_v61, %v2451_v62 }
 0xf7b   : > { %v2453_v63 = vmul.f32 0.5, %v2452_v6 }
 0xf7d   : > { %v2454_v0 = vsub.f32 1.5, %v2453_v63 }
 0xf7f   : > { %v2455_v15 = vmul.f32 %v3241_v61, %v2454_v0 }
 0xf81   : > { %v2459_v2 = vsel %vm2458_vm14, %v3241_v61, %v2455_v15 }
 0xf82   : > { %v2460_v5 = vmul.f32 %v2459_v2, %v2443_v56  ;;  %v2705_v56 = vsel %vm640_vm11, %v3082_v53, 0  ;;  %v3196_v2 = vld [vmem:[%s4257_s15] ss:$0 sm:$0xff] }
 0xf83   : > { %2723 = vmatpush.bf16.xpose.msra.mxu0 %v2705_v56 }
 0xf84   : > { %v2464_v8 = vmul.f32 %v3192_v1, %v2460_v5 }
 0xf86   : > { %v2468_v11 = vadd.f32 %v3193_v7, %v2464_v8 }
 0xf88   : > { %v2469_v29 = vpack.c.bf16 %v2468_v11, %v2468_v11 }
 0xf8a   : > { %2956 = vmatmul.msk.bf16.vlgmr.msra.gmra.mxu2 %vm640_vm11, %v2469_v29 }
 0xf8b   : > { %2724 = vmatpush.bf16.xpose.msra.mxu0 %v2702_v58 }
 0xf93   : > { %2725 = vmatpush.bf16.xpose.msra.mxu0 %v2699_v13 }
 0xf9b   : > { %2726 = vmatpush.bf16.xpose.msra.mxu0 %v2696_v4 }
0x100d   : > { %v2504_v22 = vpop.f32.mrf.mxu2 }
0x100e   : > { %v2505_v23 = vadd.f32 %v3194_v21, %v2504_v22 }
0x1010   : > { %v2508_v24 = vmul.f32 %v2505_v23, %v2505_v23 }
0x1012   : > { %v2509_v25 = vmul.f32 %v2508_v24, %v2505_v23 }
0x1014   : > { %v2510_v26 = vmul.f32 0.044715, %v2509_v25 }
0x1015   : > { %v2506_v49 = vpop.f32.mrf.mxu2 }
0x1016   : > { %v2511_v45 = vadd.f32 %v2510_v26, %v2505_v23 }
0x1018   : > { %v2512_v27 = vmul.f32 0.7978846, %v2511_v45 }
0x101a   : > { %3242 = vtanh.f32 %v2512_v27 }
0x1020   : > { %v3243_v16 = vpop.eup %3242 }
0x1021   : > { %v2514_v28 = vadd.f32 1.0, %v3243_v16 }
0x1023   : > { %v2515_v31 = vmul.f32 0.5, %v2514_v28 }
0x1025   : > { %v2516_v47 = vmul.f32 %v2515_v31, %v2505_v23 }
0x1027   : > { %v2517_v33 = vpack.c.bf16 %v2516_v47, %v2516_v47 }
0x1029   : > { %2591 = vmatmul.bf16.vlgmr.msra.gmra.mxu3 %v2517_v33 }
0x10ac   : > { %v2592_v30 = vpop.f32.mrf.mxu3 }
0x10ad   : > { %v2596_v35 = vadd.f32 %v2592_v30, %v4115_v48 }
0x10af   : > { %v2602_v36 = vadd.f32 %v3195_v34, %v2596_v35 }
0x10b1   : > { %v2605_v32 = vsel %vm640_vm11, %v2602_v36, 0.0 }
0x10b2   : > { %2606 = vadd.xlane.f32.xlu2 %v2605_v32 }
0x10b4   : > { %v2594_v37 = vpop.f32.mrf.mxu3 }
0x1125   : > { %v2607_v52 = vpop.xlane.xlu2 %2606 }
0x1126   : > { %v2608_v48 = vmul.f32 %v2607_v52, %v3540_v39 }
0x1128   : > { %v2609_v51 = vsub.f32 %v2602_v36, %v2608_v48 }
0x112a   : > { %v2610_v54 = vmul.f32 %v2609_v51, %v2609_v51 }
0x112c   : > { %v2611_v50 = vsel %vm640_vm11, %v2610_v54, 0.0 }
0x112d   : > { %2612 = vadd.xlane.f32.xlu0 %v2611_v50 }
0x11a0   : > { %v2613_v59 = vpop.xlane.xlu0 %2612 }
0x11a1   : > { %v2614_v60 = vmul.f32 %v2613_v59, %v3540_v39  ;;  %v3197_v39 = vld [vmem:[%s4258_s16] ss:$0 sm:$0xff] }
0x11a3   : > { %v2615_v61 = vadd.f32 1e-05, %v2614_v60 }
0x11a5   : > { %3244 = vrsqrt.f32 %v2615_v61  ;;  %vm2622_vm0 = vweird.f32 %v2615_v61 }
0x11ab   : > { %v3245_v62 = vpop.eup %3244 }
0x11ac   : > { %v2617_v6 = vmul.f32 %v3245_v62, %v2615_v61  ;;  %vm2623_vm15 = vweird.f32 %v3245_v62 }
0x11ad   : > { %vm2624_vm1 = vmor %vm2622_vm0, %vm2623_vm15 }
0x11ae   : > { %v2618_v63 = vmul.f32 %v3245_v62, %v2617_v6 }
0x11b0   : > { %v2619_v0 = vmul.f32 0.5, %v2618_v63 }
0x11b2   : > { %v2620_v15 = vsub.f32 1.5, %v2619_v0 }
0x11b4   : > { %v2621_v1 = vmul.f32 %v3245_v62, %v2620_v15 }
0x11b6   : > { %v2625_v5 = vsel %vm2624_vm1, %v3245_v62, %v2621_v1 }
0x11b7   : > { %v2626_v7 = vmul.f32 %v2625_v5, %v2609_v51 }
0x11b9   : > { %v2630_v8 = vmul.f32 %v3196_v2, %v2626_v7 }
0x11bb   : > { %v2634_v11 = vadd.f32 %v3197_v39, %v2630_v8 }
0x11bd   : > { %v2635_v29 = vpack.c.bf16 %v2634_v11, %v2634_v11 }
0x11bf   : > { %3038 = vmatmul.msk.bf16.vlgmr.msra.gmra.mxu0 %vm640_vm11, %v2635_v29 }
0x123c   : > { %v2728_v12 = vpop.f32.mrf.mxu0 }
0x123d   : > { %2732 = vst [vmem:[%s508_s21] sm:$0xff] %v2728_v12 }
0x123e   : > { %3285 = shalt.err (!%p3282_p2)
}
0x123f   : > { %3087 = dma.vmem_to_hbm [thread:$0]  (%p3469_p5), %s2747_s20, 128, %s2749_s1, %s2734_s18  }
0x1244   : > { %v2730_v14 = vpop.f32.mrf.mxu0 }
0x1245 PF: > { %s4305_s28 = sld [smem:[#allocation10_spill]] }
0x1246   : > { %s4306_s30 = sld [smem:[#allocation8_spill]] }
0x124b   : > { %p3093_p3 = scmp.ge.s32.totalorder %s4305_s28, 2 }
0x124c   : > { %s2760_s21 = sand.u32 1, %s4306_s30  }
0x124d   : > { %p3090_p4 = pnand %p3093_p3, %p3473_p6  ;;  %s2761_s3 = scalar_lea.sflag [#allocation5], %s2760_s21 }
0x124f   : > { %p3091_p7 = pneg %p3090_p4 }
0x1251   : > { %3305 = dma.done.wait (%p3091_p7), %s2761_s3, 128  }
0x1252   : > { %3307 = vsyncadd (%p3091_p7), %s2761_s3, 4294967168  ;;  %s4308_s30 = sld [smem:[#allocation11_spill]]  ;;  %s4311_s28 = smov %s3314_s29 }
0x1253   : > { %s4309_s2 = sld [smem:[#allocation9_spill]] }
0x1254   : > { %s4310_s0 = sld [smem:[#allocation12_spill]] }
0x1258   : > { %p35_p8 = scmp.ge.s32.totalorder %s4308_s30, 4  }
0x1259   : > { %s4312_s29 = smov %s4309_s2 }
0x125a   :  { %37 = sbr.rel (!%p35_p8) target bundleno = 21 (0x15), region = 128 }
0x125f   :  { %2767 = vsyncpa [#allocation5], 1 }
0x1260   :  { %2769 = vsyncpa [#allocation5 + $0x1], 1 }

</bundles_post_ra>
